<compile_context>
chip_gen: v6e
topology: v6e:2x2x1
jax: 0.10.0
libtpu: 0.0.40
codegen_flags: <defaults>
</compile_context>

<pallas_src>
import functools
import math

import jax
import jax.numpy as jnp
from jax.experimental import pallas as pl
from jax.experimental.pallas import tpu as pltpu

_W = 128          # lane-padded width of every layer (all feature dims <= 128)
_N_LAYERS = 8     # enc1, enc2, enc3, enc4_mu, enc4_logvar, dec1, dec2, dec3


# ------------------------------ fused kernel --------------------------------

def _vae_fused_kernel(x_ref, eps_ref, w_ref, b_ref, out_ref):
    """One (TILE_B, 128) batch tile through the entire VAE forward."""
    f32, bf16 = jnp.float32, jnp.bfloat16

    def lin(h, i):
        # bf16 operands -> native MXU pass; f32 accumulation; f32 bias add.
        return jnp.dot(h.astype(bf16), w_ref[i],
                       preferred_element_type=f32) + b_ref[i]

    # --- encoders: 3 subnets batched per layer via block-diagonal weights
    h = jnp.tanh(lin(x_ref[...], 0))
    h = jnp.tanh(lin(h, 1))
    h = jnp.tanh(lin(h, 2))
    mu_all = lin(h, 3)          # (TILE_B, 128); lanes [0, n_sub*L) are real
    lv_all = lin(h, 4)

    # --- reparameterize over the full 128 lanes (no lane slicing):
    # eps is zero outside the LAST encoder's latent lanes and the decoder
    # layer-1 weight rows are zero there too, so non-z lanes never propagate.
    z = mu_all + eps_ref[...] * jnp.exp(0.5 * lv_all)

    # --- decoders: shared z (layer 1 concat along outputs), block-diag after
    hd = jnp.tanh(lin(z, 5))
    hd = jnp.tanh(lin(hd, 6))
    xhat_all = lin(hd, 7)

    # --- lane-dense, 128-aligned output slab: [mu | logvar | xhat]
    out_ref[:, 0:_W] = mu_all
    out_ref[:, _W:2 * _W] = lv_all
    out_ref[:, 2 * _W:3 * _W] = xhat_all


# ----------------------------- pallas wrapper --------------------------------

def _round_up(x, m):
    return ((x + m - 1) // m) * m


def vae_forward_fused(x_list, eps, w_slab, b_slab, *, latent_dim, input_dims,
                      tile_b=128):
    """Single fused pallas_call for the entire VAE forward."""
    n_sub = len(input_dims)
    L = latent_dim
    B = x_list[0].shape[0]
    d_in = sum(input_dims)

    tile_b = min(tile_b, _round_up(B, 8))
    b_pad = _round_up(B, tile_b)

    # Pad inputs to the 128-lane width; eps lives on the LAST encoder's lanes.
    x_cat = jnp.concatenate(x_list, axis=1)
    x_pad = jnp.zeros((b_pad, _W), jnp.float32).at[:B, :d_in].set(x_cat)
    lo = (n_sub - 1) * L
    eps_pad = jnp.zeros((b_pad, _W), jnp.float32).at[:B, lo:lo + L].set(eps)

    out = pl.pallas_call(
        _vae_fused_kernel,
        out_shape=jax.ShapeDtypeStruct((b_pad, 3 * _W), jnp.float32),
        grid=(b_pad // tile_b,),
        in_specs=[
            pl.BlockSpec((tile_b, _W), lambda b: (b, 0)),              # x
            pl.BlockSpec((tile_b, _W), lambda b: (b, 0)),              # eps
            pl.BlockSpec((_N_LAYERS, _W, _W), lambda b: (0, 0, 0)),    # weights
            pl.BlockSpec((_N_LAYERS, 1, _W), lambda b: (0, 0, 0)),     # biases
        ],
        out_specs=pl.BlockSpec((tile_b, 3 * _W), lambda b: (b, 0)),
        compiler_params=pltpu.CompilerParams(
            dimension_semantics=("parallel",)),
    )(x_pad, eps_pad, w_slab, b_slab)

    out = out[:B]
    # Slice the lane-dense slab back into the module's outputs (free in XLA).
    mus = [out[:, i * L:(i + 1) * L] for i in range(n_sub)]
    logvars = [out[:, _W + i * L:_W + (i + 1) * L] for i in range(n_sub)]
    offs = [0]
    for d in input_dims:
        offs.append(offs[-1] + d)
    x_hats = [out[:, 2 * _W + offs[i]:2 * _W + offs[i + 1]]
              for i in range(n_sub)]
    return x_hats, mus, logvars


# ----------------------------- parameter setup -------------------------------

def _init_linear(key, in_dim, out_dim):
    """PyTorch-style uniform(-1/sqrt(in), 1/sqrt(in)) init, stored as [in,out]."""
    kw, kb = jax.random.split(key)
    bound = 1.0 / math.sqrt(in_dim)
    w = jax.random.uniform(kw, (in_dim, out_dim), jnp.float32, -bound, bound)
    b = jax.random.uniform(kb, (1, out_dim), jnp.float32, -bound, bound)
    return w, b


def init_vae_params(key, latent_dim, input_dims, hidden_dims):
    encoders, decoders = [], []
    for i, (d_in, d_h) in enumerate(zip(input_dims, hidden_dims)):
        ke = jax.random.fold_in(key, 2 * i)
        k1, k2, k3, k4 = jax.random.split(ke, 4)
        w1, b1 = _init_linear(k1, d_in, d_h)
        w2, b2 = _init_linear(k2, d_h, d_h)
        w3, b3 = _init_linear(k3, d_h, d_h)
        w4, b4 = _init_linear(k4, d_h, 2 * latent_dim)
        encoders.append(dict(w1=w1, b1=b1, w2=w2, b2=b2,
                             w3=w3, b3=b3, w4=w4, b4=b4))

        kd = jax.random.fold_in(key, 2 * i + 1)
        k1, k2, k3 = jax.random.split(kd, 3)
        w1, b1 = _init_linear(k1, latent_dim, d_h)
        w2, b2 = _init_linear(k2, d_h, d_h)
        w3, b3 = _init_linear(k3, d_h, d_in)
        decoders.append(dict(w1=w1, b1=b1, w2=w2, b2=b2, w3=w3, b3=b3))
    return encoders, decoders


def _block_diag(mats):
    rows = sum(m.shape[0] for m in mats)
    cols = sum(m.shape[1] for m in mats)
    out = jnp.zeros((rows, cols), jnp.float32)
    r = c = 0
    for m in mats:
        out = out.at[r:r + m.shape[0], c:c + m.shape[1]].set(m)
        r += m.shape[0]
        c += m.shape[1]
    return out


def _pad_block(m, rows=_W, cols=_W, row_off=0):
    assert row_off + m.shape[0] <= rows and m.shape[1] <= cols, \
        "layer dims exceed the 128-lane padded width"
    return jnp.zeros((rows, cols), jnp.float32).at[
        row_off:row_off + m.shape[0], :m.shape[1]].set(m)


def build_fused_params(enc_params, dec_params, latent_dim, input_dims):
    """Pack all weights into one (8,128,128) bf16 slab + (8,1,128) f32 biases."""
    n_sub = len(input_dims)
    L = latent_dim
    lo = (n_sub - 1) * L          # lanes of the LAST encoder's latent

    w_blocks, b_blocks = [], []

    def add(w, b, row_off=0):
        w_blocks.append(_pad_block(w, row_off=row_off))
        b_blocks.append(_pad_block(b, rows=1, cols=_W))

    # encoders: block-diagonal per layer
    add(_block_diag([p["w1"] for p in enc_params]),
        jnp.concatenate([p["b1"] for p in enc_params], axis=1))
    add(_block_diag([p["w2"] for p in enc_params]),
        jnp.concatenate([p["b2"] for p in enc_params], axis=1))
    add(_block_diag([p["w3"] for p in enc_params]),
        jnp.concatenate([p["b3"] for p in enc_params], axis=1))
    # mu / logvar heads pre-split (no in-kernel column split)
    add(_block_diag([p["w4"][:, :L] for p in enc_params]),
        jnp.concatenate([p["b4"][:, :L] for p in enc_params], axis=1))
    add(_block_diag([p["w4"][:, L:] for p in enc_params]),
        jnp.concatenate([p["b4"][:, L:] for p in enc_params], axis=1))
    # decoder layer 1: z occupies lanes [lo, lo+L) of the 128-wide z vector,
    # so its rows go at row offset `lo`; all other rows stay zero.
    add(jnp.concatenate([p["w1"] for p in dec_params], axis=1),
        jnp.concatenate([p["b1"] for p in dec_params], axis=1), row_off=lo)
    add(_block_diag([p["w2"] for p in dec_params]),
        jnp.concatenate([p["b2"] for p in dec_params], axis=1))
    add(_block_diag([p["w3"] for p in dec_params]),
        jnp.concatenate([p["b3"] for p in dec_params], axis=1))

    w_slab = jnp.stack(w_blocks).astype(jnp.bfloat16)   # (8, 128, 128) bf16
    b_slab = jnp.stack(b_blocks)                         # (8, 1, 128)   f32
    return w_slab, b_slab


# --------------------------- pure-JAX reference -------------------------------

def vae_forward_reference(x_list, eps, enc_params, dec_params, latent_dim,
                          cast=None):
    def mm(a, w):
        if cast is not None:
            a, w = a.astype(cast), w.astype(cast)
        return jnp.dot(a, w, preferred_element_type=jnp.float32)

    mus, logvars = [], []
    for x, p in zip(x_list, enc_params):
        h = jnp.tanh(mm(x, p["w1"]) + p["b1"])
        h = jnp.tanh(mm(h, p["w2"]) + p["b2"])
        h = jnp.tanh(mm(h, p["w3"]) + p["b3"])
        out = mm(h, p["w4"]) + p["b4"]
        mus.append(out[:, :latent_dim])
        logvars.append(out[:, latent_dim:])
    z = mus[-1] + eps * jnp.exp(0.5 * logvars[-1])
    x_hats = []
    for p in dec_params:
        h = jnp.tanh(mm(z, p["w1"]) + p["b1"])
        h = jnp.tanh(mm(h, p["w2"]) + p["b2"])
        x_hats.append(mm(h, p["w3"]) + p["b3"])
    return x_hats, mus, logvars


# ---------------------------------- main --------------------------------------

if __name__ == "__main__":
    latent_dim = 8
    input_dims = (16, 12, 20)      # [X_bin, X_ord, X_cont] feature widths
    hidden_dims = (32, 32, 32)
    batch = 256                    # two 128-row batch tiles -> grid=(2,)

    key = jax.random.PRNGKey(0)
    k_params, k_x, k_eps = jax.random.split(key, 3)

    enc_params, dec_params = init_vae_params(
        k_params, latent_dim, input_dims, hidden_dims)
    w_slab, b_slab = build_fused_params(
        enc_params, dec_params, latent_dim, input_dims)

    x_keys = jax.random.split(k_x, len(input_dims))
    x_list = [jax.random.normal(xk, (batch, d), jnp.float32)
              for xk, d in zip(x_keys, input_dims)]
    eps = jax.random.normal(k_eps, (batch, latent_dim), jnp.float32)

    fwd = jax.jit(functools.partial(
        vae_forward_fused, latent_dim=latent_dim, input_dims=input_dims))

    x_hats, mus, logvars = fwd(x_list, eps, w_slab, b_slab)
    jax.block_until_ready((x_hats, mus, logvars))

    # shape sanity (matches the PyTorch module's outputs)
    assert all(xh.shape == (batch, d) for xh, d in zip(x_hats, input_dims))
    assert all(m.shape == (batch, latent_dim) for m in mus)
    assert all(lv.shape == (batch, latent_dim) for lv in logvars)

    # (a) matched-precision check (bf16 matmuls, f32 elementwise) — tight
    rx, rm, rl = vae_forward_reference(x_list, eps, enc_params, dec_params,
                                       latent_dim, cast=jnp.bfloat16)
    for a, b in zip(x_hats + mus + logvars, rx + rm + rl):
        assert jnp.allclose(a, b, rtol=2e-3, atol=2e-3), float(
            jnp.max(jnp.abs(a - b)))

    # (b) semantic check vs pure-f32 reference — loose (bf16 weights on MXU)
    rx, rm, rl = vae_forward_reference(x_list, eps, enc_params, dec_params,
                                       latent_dim)
    for a, b in zip(x_hats + mus + logvars, rx + rm + rl):
        assert jnp.allclose(a, b, rtol=5e-2, atol=5e-2), float(
            jnp.max(jnp.abs(a - b)))

    print("KERNEL_OK")
</pallas_src>

<mosaic_0001>
module attributes {stable_mosaic.version = 11 : i64} {
  func.func @_vae_fused_kernel(%arg0: i32, %arg1: memref<128x128xf32, #tpu.memory_space<vmem>>, %arg2: memref<128x128xf32, #tpu.memory_space<vmem>>, %arg3: memref<8x128x128xbf16, #tpu.memory_space<vmem>>, %arg4: memref<8x1x128xf32, #tpu.memory_space<vmem>>, %arg5: memref<128x384xf32, #tpu.memory_space<vmem>>) attributes {dimension_semantics = [#tpu.dimension_semantics<parallel>], iteration_bounds = array<i64: 2>, scalar_prefetch = 0 : i64, scratch_operands = 0 : i64, tpu.core_type = #tpu.core_type<tc>, window_params = [{transform_indices = @transform_0, window_bounds = array<i64: 128, 128>}, {transform_indices = @transform_1, window_bounds = array<i64: 128, 128>}, {pipeline_mode = #tpu.pipeline_mode<synchronous>, transform_indices = @transform_2, window_bounds = array<i64: 8, 128, 128>}, {pipeline_mode = #tpu.pipeline_mode<synchronous>, transform_indices = @transform_3, window_bounds = array<i64: 8, 1, 128>}, {transform_indices = @transform_4, window_bounds = array<i64: 128, 384>}]} {
    %c0 = arith.constant 0 : index
    %c0_0 = arith.constant 0 : index
    %0 = vector.load %arg1[%c0, %c0_0] : memref<128x128xf32, #tpu.memory_space<vmem>>, vector<128x128xf32>
    %1 = arith.truncf %0 : vector<128x128xf32> to vector<128x128xbf16>
    %c0_1 = arith.constant 0 : index
    %c0_2 = arith.constant 0 : index
    %c0_3 = arith.constant 0 : index
    %2 = vector.load %arg3[%c0_1, %c0_2, %c0_3] : memref<8x128x128xbf16, #tpu.memory_space<vmem>>, vector<1x128x128xbf16>
    %3 = vector.shape_cast %2 : vector<1x128x128xbf16> to vector<128x128xbf16>
    %cst = arith.constant dense<0.000000e+00> : vector<128x128xf32>
    %4 = tpu.matmul %1, %3, %cst {dimension_numbers = #tpu.dot_dimension_numbers<[1], [0], [0], [1], [0, 0, 1, 1], [], []>} : vector<128x128xbf16>, vector<128x128xbf16>, vector<128x128xf32> -> vector<128x128xf32>
    %c0_4 = arith.constant 0 : index
    %c0_5 = arith.constant 0 : index
    %c0_6 = arith.constant 0 : index
    %5 = vector.load %arg4[%c0_4, %c0_5, %c0_6] : memref<8x1x128xf32, #tpu.memory_space<vmem>>, vector<1x1x128xf32>
    %6 = vector.shape_cast %5 : vector<1x1x128xf32> to vector<1x128xf32>
    %7 = vector.broadcast %6 : vector<1x128xf32> to vector<128x128xf32>
    %8 = arith.addf %4, %7 : vector<128x128xf32>
    %9 = math.tanh %8 : vector<128x128xf32>
    %10 = arith.truncf %9 : vector<128x128xf32> to vector<128x128xbf16>
    %c1 = arith.constant 1 : index
    %c0_7 = arith.constant 0 : index
    %c0_8 = arith.constant 0 : index
    %11 = vector.load %arg3[%c1, %c0_7, %c0_8] : memref<8x128x128xbf16, #tpu.memory_space<vmem>>, vector<1x128x128xbf16>
    %12 = vector.shape_cast %11 : vector<1x128x128xbf16> to vector<128x128xbf16>
    %cst_9 = arith.constant dense<0.000000e+00> : vector<128x128xf32>
    %13 = tpu.matmul %10, %12, %cst_9 {dimension_numbers = #tpu.dot_dimension_numbers<[1], [0], [0], [1], [0, 0, 1, 1], [], []>} : vector<128x128xbf16>, vector<128x128xbf16>, vector<128x128xf32> -> vector<128x128xf32>
    %c1_10 = arith.constant 1 : index
    %c0_11 = arith.constant 0 : index
    %c0_12 = arith.constant 0 : index
    %14 = vector.load %arg4[%c1_10, %c0_11, %c0_12] : memref<8x1x128xf32, #tpu.memory_space<vmem>>, vector<1x1x128xf32>
    %15 = vector.shape_cast %14 : vector<1x1x128xf32> to vector<1x128xf32>
    %16 = vector.broadcast %15 : vector<1x128xf32> to vector<128x128xf32>
    %17 = arith.addf %13, %16 : vector<128x128xf32>
    %18 = math.tanh %17 : vector<128x128xf32>
    %19 = arith.truncf %18 : vector<128x128xf32> to vector<128x128xbf16>
    %c2 = arith.constant 2 : index
    %c0_13 = arith.constant 0 : index
    %c0_14 = arith.constant 0 : index
    %20 = vector.load %arg3[%c2, %c0_13, %c0_14] : memref<8x128x128xbf16, #tpu.memory_space<vmem>>, vector<1x128x128xbf16>
    %21 = vector.shape_cast %20 : vector<1x128x128xbf16> to vector<128x128xbf16>
    %cst_15 = arith.constant dense<0.000000e+00> : vector<128x128xf32>
    %22 = tpu.matmul %19, %21, %cst_15 {dimension_numbers = #tpu.dot_dimension_numbers<[1], [0], [0], [1], [0, 0, 1, 1], [], []>} : vector<128x128xbf16>, vector<128x128xbf16>, vector<128x128xf32> -> vector<128x128xf32>
    %c2_16 = arith.constant 2 : index
    %c0_17 = arith.constant 0 : index
    %c0_18 = arith.constant 0 : index
    %23 = vector.load %arg4[%c2_16, %c0_17, %c0_18] : memref<8x1x128xf32, #tpu.memory_space<vmem>>, vector<1x1x128xf32>
    %24 = vector.shape_cast %23 : vector<1x1x128xf32> to vector<1x128xf32>
    %25 = vector.broadcast %24 : vector<1x128xf32> to vector<128x128xf32>
    %26 = arith.addf %22, %25 : vector<128x128xf32>
    %27 = math.tanh %26 : vector<128x128xf32>
    %28 = arith.truncf %27 : vector<128x128xf32> to vector<128x128xbf16>
    %c3 = arith.constant 3 : index
    %c0_19 = arith.constant 0 : index
    %c0_20 = arith.constant 0 : index
    %29 = vector.load %arg3[%c3, %c0_19, %c0_20] : memref<8x128x128xbf16, #tpu.memory_space<vmem>>, vector<1x128x128xbf16>
    %30 = vector.shape_cast %29 : vector<1x128x128xbf16> to vector<128x128xbf16>
    %cst_21 = arith.constant dense<0.000000e+00> : vector<128x128xf32>
    %31 = tpu.matmul %28, %30, %cst_21 {dimension_numbers = #tpu.dot_dimension_numbers<[1], [0], [0], [1], [0, 0, 1, 1], [], []>} : vector<128x128xbf16>, vector<128x128xbf16>, vector<128x128xf32> -> vector<128x128xf32>
    %c3_22 = arith.constant 3 : index
    %c0_23 = arith.constant 0 : index
    %c0_24 = arith.constant 0 : index
    %32 = vector.load %arg4[%c3_22, %c0_23, %c0_24] : memref<8x1x128xf32, #tpu.memory_space<vmem>>, vector<1x1x128xf32>
    %33 = vector.shape_cast %32 : vector<1x1x128xf32> to vector<1x128xf32>
    %34 = vector.broadcast %33 : vector<1x128xf32> to vector<128x128xf32>
    %35 = arith.addf %31, %34 : vector<128x128xf32>
    %36 = arith.truncf %27 : vector<128x128xf32> to vector<128x128xbf16>
    %c4 = arith.constant 4 : index
    %c0_25 = arith.constant 0 : index
    %c0_26 = arith.constant 0 : index
    %37 = vector.load %arg3[%c4, %c0_25, %c0_26] : memref<8x128x128xbf16, #tpu.memory_space<vmem>>, vector<1x128x128xbf16>
    %38 = vector.shape_cast %37 : vector<1x128x128xbf16> to vector<128x128xbf16>
    %cst_27 = arith.constant dense<0.000000e+00> : vector<128x128xf32>
    %39 = tpu.matmul %36, %38, %cst_27 {dimension_numbers = #tpu.dot_dimension_numbers<[1], [0], [0], [1], [0, 0, 1, 1], [], []>} : vector<128x128xbf16>, vector<128x128xbf16>, vector<128x128xf32> -> vector<128x128xf32>
    %c4_28 = arith.constant 4 : index
    %c0_29 = arith.constant 0 : index
    %c0_30 = arith.constant 0 : index
    %40 = vector.load %arg4[%c4_28, %c0_29, %c0_30] : memref<8x1x128xf32, #tpu.memory_space<vmem>>, vector<1x1x128xf32>
    %41 = vector.shape_cast %40 : vector<1x1x128xf32> to vector<1x128xf32>
    %42 = vector.broadcast %41 : vector<1x128xf32> to vector<128x128xf32>
    %43 = arith.addf %39, %42 : vector<128x128xf32>
    %c0_31 = arith.constant 0 : index
    %c0_32 = arith.constant 0 : index
    %44 = vector.load %arg2[%c0_31, %c0_32] : memref<128x128xf32, #tpu.memory_space<vmem>>, vector<128x128xf32>
    %cst_33 = arith.constant 5.000000e-01 : f32
    %45 = vector.broadcast %cst_33 : f32 to vector<128x128xf32>
    %46 = arith.mulf %45, %43 : vector<128x128xf32>
    %47 = math.exp %46 : vector<128x128xf32>
    %48 = arith.mulf %44, %47 : vector<128x128xf32>
    %49 = arith.addf %35, %48 : vector<128x128xf32>
    %50 = arith.truncf %49 : vector<128x128xf32> to vector<128x128xbf16>
    %c5 = arith.constant 5 : index
    %c0_34 = arith.constant 0 : index
    %c0_35 = arith.constant 0 : index
    %51 = vector.load %arg3[%c5, %c0_34, %c0_35] : memref<8x128x128xbf16, #tpu.memory_space<vmem>>, vector<1x128x128xbf16>
    %52 = vector.shape_cast %51 : vector<1x128x128xbf16> to vector<128x128xbf16>
    %cst_36 = arith.constant dense<0.000000e+00> : vector<128x128xf32>
    %53 = tpu.matmul %50, %52, %cst_36 {dimension_numbers = #tpu.dot_dimension_numbers<[1], [0], [0], [1], [0, 0, 1, 1], [], []>} : vector<128x128xbf16>, vector<128x128xbf16>, vector<128x128xf32> -> vector<128x128xf32>
    %c5_37 = arith.constant 5 : index
    %c0_38 = arith.constant 0 : index
    %c0_39 = arith.constant 0 : index
    %54 = vector.load %arg4[%c5_37, %c0_38, %c0_39] : memref<8x1x128xf32, #tpu.memory_space<vmem>>, vector<1x1x128xf32>
    %55 = vector.shape_cast %54 : vector<1x1x128xf32> to vector<1x128xf32>
    %56 = vector.broadcast %55 : vector<1x128xf32> to vector<128x128xf32>
    %57 = arith.addf %53, %56 : vector<128x128xf32>
    %58 = math.tanh %57 : vector<128x128xf32>
    %59 = arith.truncf %58 : vector<128x128xf32> to vector<128x128xbf16>
    %c6 = arith.constant 6 : index
    %c0_40 = arith.constant 0 : index
    %c0_41 = arith.constant 0 : index
    %60 = vector.load %arg3[%c6, %c0_40, %c0_41] : memref<8x128x128xbf16, #tpu.memory_space<vmem>>, vector<1x128x128xbf16>
    %61 = vector.shape_cast %60 : vector<1x128x128xbf16> to vector<128x128xbf16>
    %cst_42 = arith.constant dense<0.000000e+00> : vector<128x128xf32>
    %62 = tpu.matmul %59, %61, %cst_42 {dimension_numbers = #tpu.dot_dimension_numbers<[1], [0], [0], [1], [0, 0, 1, 1], [], []>} : vector<128x128xbf16>, vector<128x128xbf16>, vector<128x128xf32> -> vector<128x128xf32>
    %c6_43 = arith.constant 6 : index
    %c0_44 = arith.constant 0 : index
    %c0_45 = arith.constant 0 : index
    %63 = vector.load %arg4[%c6_43, %c0_44, %c0_45] : memref<8x1x128xf32, #tpu.memory_space<vmem>>, vector<1x1x128xf32>
    %64 = vector.shape_cast %63 : vector<1x1x128xf32> to vector<1x128xf32>
    %65 = vector.broadcast %64 : vector<1x128xf32> to vector<128x128xf32>
    %66 = arith.addf %62, %65 : vector<128x128xf32>
    %67 = math.tanh %66 : vector<128x128xf32>
    %68 = arith.truncf %67 : vector<128x128xf32> to vector<128x128xbf16>
    %c7 = arith.constant 7 : index
    %c0_46 = arith.constant 0 : index
    %c0_47 = arith.constant 0 : index
    %69 = vector.load %arg3[%c7, %c0_46, %c0_47] : memref<8x128x128xbf16, #tpu.memory_space<vmem>>, vector<1x128x128xbf16>
    %70 = vector.shape_cast %69 : vector<1x128x128xbf16> to vector<128x128xbf16>
    %cst_48 = arith.constant dense<0.000000e+00> : vector<128x128xf32>
    %71 = tpu.matmul %68, %70, %cst_48 {dimension_numbers = #tpu.dot_dimension_numbers<[1], [0], [0], [1], [0, 0, 1, 1], [], []>} : vector<128x128xbf16>, vector<128x128xbf16>, vector<128x128xf32> -> vector<128x128xf32>
    %c7_49 = arith.constant 7 : index
    %c0_50 = arith.constant 0 : index
    %c0_51 = arith.constant 0 : index
    %72 = vector.load %arg4[%c7_49, %c0_50, %c0_51] : memref<8x1x128xf32, #tpu.memory_space<vmem>>, vector<1x1x128xf32>
    %73 = vector.shape_cast %72 : vector<1x1x128xf32> to vector<1x128xf32>
    %74 = vector.broadcast %73 : vector<1x128xf32> to vector<128x128xf32>
    %75 = arith.addf %71, %74 : vector<128x128xf32>
    %c0_52 = arith.constant 0 : index
    %c0_53 = arith.constant 0 : index
    %76 = vector.load %arg5[%c0_52, %c0_53] : memref<128x384xf32, #tpu.memory_space<vmem>>, vector<128x128xf32>
    tpu.vector_store %arg5[%c0_52, %c0_53], %35 {strides = array<i32>} : memref<128x384xf32, #tpu.memory_space<vmem>>, vector<128x128xf32>,
    %c0_54 = arith.constant 0 : index
    %c128 = arith.constant 128 : index
    %77 = vector.load %arg5[%c0_54, %c128] : memref<128x384xf32, #tpu.memory_space<vmem>>, vector<128x128xf32>
    tpu.vector_store %arg5[%c0_54, %c128], %43 {strides = array<i32>} : memref<128x384xf32, #tpu.memory_space<vmem>>, vector<128x128xf32>,
    %c0_55 = arith.constant 0 : index
    %c256 = arith.constant 256 : index
    %78 = vector.load %arg5[%c0_55, %c256] : memref<128x384xf32, #tpu.memory_space<vmem>>, vector<128x128xf32>
    tpu.vector_store %arg5[%c0_55, %c256], %75 {strides = array<i32>} : memref<128x384xf32, #tpu.memory_space<vmem>>, vector<128x128xf32>,
    return
  }
  func.func @transform_0(%arg0: i32) -> (i32, i32) {
    %c0_i32 = arith.constant 0 : i32
    %c0_i32_0 = arith.constant 0 : i32
    return %arg0, %c0_i32 : i32, i32
  }
  func.func @transform_1(%arg0: i32) -> (i32, i32) {
    %c0_i32 = arith.constant 0 : i32
    %c0_i32_0 = arith.constant 0 : i32
    return %arg0, %c0_i32 : i32, i32
  }
  func.func @transform_2(%arg0: i32) -> (i32, i32, i32) {
    %c0_i32 = arith.constant 0 : i32
    %c0_i32_0 = arith.constant 0 : i32
    %c0_i32_1 = arith.constant 0 : i32
    %c0_i32_2 = arith.constant 0 : i32
    return %c0_i32, %c0_i32_0, %c0_i32_1 : i32, i32, i32
  }
  func.func @transform_3(%arg0: i32) -> (i32, i32, i32) {
    %c0_i32 = arith.constant 0 : i32
    %c0_i32_0 = arith.constant 0 : i32
    %c0_i32_1 = arith.constant 0 : i32
    %c0_i32_2 = arith.constant 0 : i32
    return %c0_i32, %c0_i32_0, %c0_i32_1 : i32, i32, i32
  }
  func.func @transform_4(%arg0: i32) -> (i32, i32) {
    %c0_i32 = arith.constant 0 : i32
    %c0_i32_0 = arith.constant 0 : i32
    return %arg0, %c0_i32 : i32, i32
  }
}

</mosaic_0001>

<bundles_post_ra>
// kernel: vae_forward_fused.1
= control target key start
LH: loop header
LB: loop body
LE: loop exit
PB: predicated region body
PF: predicated region fallthrough
CT: control target
= control target key end

     0   :  { %s2836_s15 = smov 0   ;;  %s3266_s0 = inlined_call_operand.vmem [shape: f32[256,128], index: 0, kind: input, shape index: {}]   ;;  %s3267_s1 = inlined_call_operand.vmem [shape: f32[256,128], index: 1, kind: input, shape index: {}]   ;;  %s3268_s2 = inlined_call_operand.vmem [shape: bf16[8,128,128], index: 2, kind: input, shape index: {}]   ;;  %s3269_s3 = inlined_call_operand.vmem [shape: f32[8,1,128], index: 3, kind: input, shape index: {}]   ;;  %s3270_s4 = inlined_call_operand.vmem [shape: f32[256,384], index: 4, kind: output, shape index: {}]  }
   0x1 LB: > { %s1950_s16 = sadd.s32 4294967295, %s2809_s15   ;;  %p1954_p0 = scmp.ge.s32.totalorder %s2809_s15, 1  ;;  %s2809_s15 = sphi %s2836_s15, %s14_s15  }
   0x2   : > { %p174_p1 = scmp.lt.s32.totalorder %s2809_s15, 3 }
   0x4   : > { %p175_p2 = pnand %p1954_p0, %p174_p1 }
   0x5   : > { %s1955_s19 = sshll.u32 (!%p175_p2), %s1950_s16, 4 }
   0x6   : > { %178 = sbr.rel (%p175_p2) target bundleno = 1587 (0x633), region = 36  ;;  %p207_p3 = scmp.lt.s32.totalorder (!%p175_p2), %s1955_s19, 31 }
   0xb   : > { %v2547_v0 = vld [vmem:[%s3268_s2 + $0x38] sm:$0xff]   ;;  %v2548_v1 = vld [vmem:[%s3268_s2 + $0x30] sm:$0xff]   ;;  %s3272_s19 = smov (!%p207_p3, %s1955_s19), 31  ;;  %v2549_v2 = vld [vmem:[%s3268_s2 + $0x28] sm:$0xff]  }
   0xc   : > { %2282 = vmatprep.subr.bf16.mxu0 %v2547_v0  ;;  %s1956_s24 = sshll.u32 %s3272_s19, 3  ;;  %v2550_v3 = vld [vmem:[%s3268_s2 + $0x20] sm:$0xff]   ;;  %v2551_v7 = vld [vmem:[%s3268_s2 + $0x18] sm:$0xff]   ;;  %v2552_v8 = vld [vmem:[%s3268_s2 + $0x10] sm:$0xff]   ;;  %s2538_s10 = smul.u32 24, %s3272_s19 }
   0xd   : > { %2283 = vmatpush3.bf16.msra.mxu0 %v2547_v0  ;;  %s2861_s27 = scalar_lea.vmem %s3266_s0, %s1956_s24  ;;  %v2555_v9 = vld [vmem:[%s3268_s2 + $0x78] sm:$0xff]   ;;  %v2556_v10 = vld [vmem:[%s3268_s2 + $0x70] sm:$0xff]   ;;  %v2553_v11 = vld [vmem:[%s3268_s2 + $0x8] sm:$0xff]   ;;  %s3109_s22 = scalar_lea.vmem %s3267_s1, %s1956_s24 }
   0xe   : > { %2284 = vmatprep.subr.bf16.mxu0 %v2548_v1  ;;  %v226_v4 = vld [vmem:[%s2861_s27] sm:$0xff]  ;;  %v227_v5 = vld [vmem:[%s2861_s27 + $0x8] sm:$0xff]  ;;  %2314 = vmatprep.subr.bf16.mxu1 %v2555_v9  ;;  %v228_v13 = vld [vmem:[%s2861_s27 + $0x10] sm:$0xff]  ;;  %s3043_s18 = scalar_lea.vmem %s3270_s4, %s2538_s10 }
   0xf   : > { %v242_v6 = vpack.c.bf16 %v227_v5, %v226_v4  ;;  %2315 = vmatpush3.bf16.msra.mxu1 %v2555_v9  ;;  %v2554_v12 = vld [vmem:[%s3268_s2] sm:$0xff]   ;;  %v229_v14 = vld [vmem:[%s2861_s27 + $0x18] sm:$0xff]  ;;  %v231_v16 = vld [vmem:[%s2861_s27 + $0x28] sm:$0xff] }
  0x10   : > { %2316 = vmatprep.subr.bf16.mxu1 %v2556_v10  ;;  %v230_v15 = vld [vmem:[%s2861_s27 + $0x20] sm:$0xff]  ;;  %v243_v17 = vpack.c.bf16 %v229_v14, %v228_v13  ;;  %v232_v19 = vld [vmem:[%s2861_s27 + $0x30] sm:$0xff]  ;;  %v233_v20 = vld [vmem:[%s2861_s27 + $0x38] sm:$0xff] }
  0x11   : > { %2285 = vmatpush3.bf16.msra.mxu0 %v2548_v1  ;;  %2298 = vmatprep.mubr.bf16.mxu0 %v242_v6  ;;  %v244_v18 = vpack.c.bf16 %v231_v16, %v230_v15  ;;  %v234_v21 = vld [vmem:[%s2861_s27 + $0x40] sm:$0xff]  ;;  %v235_v22 = vld [vmem:[%s2861_s27 + $0x48] sm:$0xff]  ;;  %v245_v23 = vpack.c.bf16 %v233_v20, %v232_v19  ;;  %v236_v25 = vld [vmem:[%s2861_s27 + $0x50] sm:$0xff] }
  0x12   : > { %2286 = vmatprep.subr.bf16.mxu0 %v2549_v2  ;;  %v246_v24 = vpack.c.bf16 %v235_v22, %v234_v21  ;;  %v237_v26 = vld [vmem:[%s2861_s27 + $0x58] sm:$0xff]  ;;  %v238_v27 = vld [vmem:[%s2861_s27 + $0x60] sm:$0xff]  ;;  %v239_v28 = vld [vmem:[%s2861_s27 + $0x68] sm:$0xff] }
  0x13   : > { %2317 = vmatpush3.bf16.msra.mxu1 %v2556_v10  ;;  %v247_v29 = vpack.c.bf16 %v237_v26, %v236_v25  ;;  %v248_v30 = vpack.c.bf16 %v239_v28, %v238_v27  ;;  %v240_v31 = vld [vmem:[%s2861_s27 + $0x70] sm:$0xff]  ;;  %v241_v32 = vld [vmem:[%s2861_s27 + $0x78] sm:$0xff]  ;;  %v2557_v34 = vld [vmem:[%s3268_s2 + $0x68] sm:$0xff]  }
  0x14   : > { %v249_v33 = vpack.c.bf16 %v241_v32, %v240_v31  ;;  %2318 = vmatprep.subr.bf16.mxu1 %v2557_v34  ;;  %v2558_v35 = vld [vmem:[%s3268_s2 + $0x60] sm:$0xff]   ;;  %v2559_v36 = vld [vmem:[%s3268_s2 + $0x58] sm:$0xff]   ;;  %v2560_v37 = vld [vmem:[%s3268_s2 + $0x50] sm:$0xff]  }
  0x15   : > { %2287 = vmatpush3.bf16.msra.mxu0 %v2549_v2  ;;  %v2561_v38 = vld [vmem:[%s3268_s2 + $0x48] sm:$0xff]   ;;  %v2562_v39 = vld [vmem:[%s3268_s2 + $0x40] sm:$0xff]   ;;  %v2563_v40 = vld [vmem:[%s3268_s2 + $0xb8] sm:$0xff]  }
  0x16   : > { %2288 = vmatprep.subr.bf16.mxu0 %v2550_v3  ;;  %v2564_v41 = vld [vmem:[%s3268_s2 + $0xb0] sm:$0xff]   ;;  %v1961_v43 = vld [vmem:[%s3269_s3] ss:$0 sm:$0xff] }
  0x17   : > { %2319 = vmatpush3.bf16.msra.mxu1 %v2557_v34 }
  0x18   : > { %2320 = vmatprep.subr.bf16.mxu1 %v2558_v35 }
  0x19   : > { %2289 = vmatpush3.bf16.msra.mxu0 %v2550_v3 }
  0x1a   : > { %2290 = vmatprep.subr.bf16.mxu0 %v2551_v7 }
  0x1b   : > { %2321 = vmatpush3.bf16.msra.mxu1 %v2558_v35  ;;  %v2565_v35 = vld [vmem:[%s3268_s2 + $0xa8] sm:$0xff]  }
  0x1c   : > { %2322 = vmatprep.subr.bf16.mxu1 %v2559_v36 }
  0x1d   : > { %2291 = vmatpush3.bf16.msra.mxu0 %v2551_v7 }
  0x1e   : > { %2292 = vmatprep.subr.bf16.mxu0 %v2552_v8 }
  0x1f   : > { %2323 = vmatpush3.bf16.msra.mxu1 %v2559_v36  ;;  %v2566_v36 = vld [vmem:[%s3268_s2 + $0xa0] sm:$0xff]  }
  0x20   : > { %2324 = vmatprep.subr.bf16.mxu1 %v2560_v37 }
  0x21   : > { %2293 = vmatpush3.bf16.msra.mxu0 %v2552_v8 }
  0x22   : > { %2294 = vmatprep.subr.bf16.mxu0 %v2553_v11 }
  0x23   : > { %2325 = vmatpush3.bf16.msra.mxu1 %v2560_v37  ;;  %v2567_v37 = vld [vmem:[%s3268_s2 + $0x98] sm:$0xff]  }
  0x24   : > { %2326 = vmatprep.subr.bf16.mxu1 %v2561_v38 }
  0x25   : > { %2295 = vmatpush3.bf16.msra.mxu0 %v2553_v11 }
  0x26   : > { %2296 = vmatprep.subr.bf16.mxu0 %v2554_v12 }
  0x27   : > { %2327 = vmatpush3.bf16.msra.mxu1 %v2561_v38  ;;  %v2568_v38 = vld [vmem:[%s3268_s2 + $0x90] sm:$0xff]  }
  0x28   : > { %2328 = vmatprep.subr.bf16.mxu1 %v2562_v39 }
  0x29   : > { %2297 = vmatpush3.bf16.msra.mxu0 %v2554_v12 }
  0x2a   : > { %2346 = vmatprep.subr.bf16.mxu0 %v2563_v40 }
  0x2b   : > { %2329 = vmatpush3.bf16.msra.mxu1 %v2562_v39  ;;  %v2569_v39 = vld [vmem:[%s3268_s2 + $0x88] sm:$0xff]  }
  0x2c   : > { %2299 = vmatmul.mubr.bf16.vlgmr.msra.gmra.mxu0 %v243_v17 }
  0x2d   : > { %2302 = vmatprep.mubr.bf16.mxu0 %v244_v18  ;;  %2347 = vmatpush3.bf16.msra.mxu0 %v2563_v40  ;;  %v2570_v40 = vld [vmem:[%s3268_s2 + $0x80] sm:$0xff]  }
  0x2e   : > { %2348 = vmatprep.subr.bf16.mxu0 %v2564_v41 }
  0x31   : > { %2349 = vmatpush3.bf16.msra.mxu0 %v2564_v41  ;;  %v2571_v41 = vld [vmem:[%s3268_s2 + $0x138] sm:$0xff]  }
  0x32   : > { %2350 = vmatprep.subr.bf16.mxu0 %v2565_v35 }
  0x34   : > { %2303 = vmatmul.mubr.bf16.gmra.mxu0 %v245_v23 }
  0x35   : > { %2306 = vmatprep.mubr.bf16.mxu0 %v246_v24  ;;  %2351 = vmatpush3.bf16.msra.mxu0 %v2565_v35 }
  0x36   : > { %2352 = vmatprep.subr.bf16.mxu0 %v2566_v36 }
  0x39   : > { %2353 = vmatpush3.bf16.msra.mxu0 %v2566_v36 }
  0x3a   : > { %2354 = vmatprep.subr.bf16.mxu0 %v2567_v37 }
  0x3c   : > { %2307 = vmatmul.mubr.bf16.gmra.mxu0 %v247_v29 }
  0x3d   : > { %2310 = vmatprep.mubr.bf16.mxu0 %v248_v30  ;;  %2355 = vmatpush3.bf16.msra.mxu0 %v2567_v37 }
  0x3e   : > { %2356 = vmatprep.subr.bf16.mxu0 %v2568_v38 }
  0x41   : > { %2357 = vmatpush3.bf16.msra.mxu0 %v2568_v38  ;;  %v2575_v38 = vld [vmem:[%s3268_s2 + $0x128] sm:$0xff]  }
  0x42   : > { %2358 = vmatprep.subr.bf16.mxu0 %v2569_v39 }
  0x44   : > { %2311 = vmatmul.mubr.bf16.gmra.mxu0 %v249_v33 }
  0x45   : > { %2359 = vmatpush3.bf16.msra.mxu0 %v2569_v39  ;;  %v2576_v39 = vld [vmem:[%s3268_s2 + $0xe8] sm:$0xff]  }
  0x46   : > { %2360 = vmatprep.subr.bf16.mxu0 %v2570_v40 }
  0x49   : > { %2361 = vmatpush3.bf16.msra.mxu0 %v2570_v40  ;;  %v2577_v40 = vld [vmem:[%s3268_s2 + $0x120] sm:$0xff]  }
  0x4a   : > { %2410 = vmatprep.subr.bf16.mxu0 %v2571_v41 }
  0xec   : > { %v2300_v42 = vpop.f32.mrf.mxu0 }
  0xed   : > { %v364_v48 = vadd.f32 %v2300_v42, %v1961_v43  ;;  %v2572_v42 = vld [vmem:[%s3268_s2 + $0xf8] sm:$0xff]  }
  0xee   : > { %v355_v44 = vpop.f32.mrf.mxu0  ;;  %2378 = vmatprep.subr.bf16.mxu1 %v2572_v42 }
  0xef   : > { %v356_v45 = vadd.f32 %v1961_v43, %v355_v44 }
  0xf0   : > { %v2301_v46 = vpop.f32.mrf.mxu0 }
  0xf1   : > { %v367_v47 = vadd.f32 %v2301_v46, %v1961_v43  ;;  %2611 = vtanh.f32 %v356_v45  ;;  %v1987_v45 = vld [vmem:[%s3269_s3 + $0x1] ss:$0 sm:$0xff] }
  0xf2   : > { %v358_v49 = vpop.f32.mrf.mxu0 }
  0xf3   : > { %v359_v50 = vadd.f32 %v1961_v43, %v358_v49  ;;  %2613 = vtanh.f32 %v367_v47 }
  0xf4   : > { %v2304_v51 = vpop.f32.mrf.mxu0 }
  0xf5   : > { %2615 = vtanh.f32 %v359_v50  ;;  %v380_v56 = vadd.f32 %v2304_v51, %v1961_v43 }
  0xf6   : > { %2617 = vtanh.f32 %v364_v48  ;;  %v371_v52 = vpop.f32.mrf.mxu0 }
  0xf7   : > { %v372_v53 = vadd.f32 %v1961_v43, %v371_v52 }
  0xf8   : > { %v2305_v54 = vpop.f32.mrf.mxu0 }
  0xf9   : > { %v383_v55 = vadd.f32 %v2305_v54, %v1961_v43  ;;  %2619 = vtanh.f32 %v372_v53 }
  0xfa   : > { %v374_v57 = vpop.f32.mrf.mxu0 }
  0xfb   : > { %v375_v58 = vadd.f32 %v1961_v43, %v374_v57  ;;  %2621 = vtanh.f32 %v383_v55 }
  0xfc   : > { %v2308_v59 = vpop.f32.mrf.mxu0 }
  0xfd   : > { %2623 = vtanh.f32 %v375_v58  ;;  %v396_v3 = vadd.f32 %v2308_v59, %v1961_v43 }
  0xfe   : > { %2625 = vtanh.f32 %v380_v56  ;;  %v387_v60 = vpop.f32.mrf.mxu0  ;;  %v2612_v62 = vpop.eup %2611 }
  0xff   : > { %v388_v61 = vadd.f32 %v1961_v43, %v387_v60 }
 0x100   : > { %v2309_v63 = vpop.f32.mrf.mxu0  ;;  %v2614_v0 = vpop.eup %2613 }
 0x101   : > { %v399_v1 = vadd.f32 %v2309_v63, %v1961_v43  ;;  %2627 = vtanh.f32 %v388_v61 }
 0x102   : > { %v2616_v2 = vpop.eup %2615  ;;  %v390_v4 = vpop.f32.mrf.mxu0 }
 0x103   : > { %v2618_v5 = vpop.eup %2617  ;;  %v391_v6 = vadd.f32 %v1961_v43, %v390_v4  ;;  %v434_v7 = vpack.c.bf16 %v2616_v2, %v2612_v62  ;;  %2629 = vtanh.f32 %v399_v1 }
 0x104   : > { %v2312_v8 = vpop.f32.mrf.mxu0  ;;  %v435_v9 = vpack.c.bf16 %v2614_v0, %v2618_v5 }
 0x105   : > { %2631 = vtanh.f32 %v391_v6  ;;  %2330 = vmatprep.mubr.bf16.mxu1 %v434_v7  ;;  %v412_v17 = vadd.f32 %v2312_v8, %v1961_v43 }
 0x106   : > { %2633 = vtanh.f32 %v396_v3  ;;  %v403_v10 = vpop.f32.mrf.mxu0  ;;  %2331 = vmatmul.mubr.bf16.vlgmr.msra.gmra.mxu1 %v435_v9  ;;  %v2620_v12 = vpop.eup %2619 }
 0x107   : > { %v404_v11 = vadd.f32 %v1961_v43, %v403_v10  ;;  %2379 = vmatpush3.bf16.msra.mxu1 %v2572_v42  ;;  %v2579_v42 = vld [vmem:[%s3268_s2 + $0x118] sm:$0xff]  }
 0x108   : > { %v2313_v13 = vpop.f32.mrf.mxu0  ;;  %v2622_v14 = vpop.eup %2621 }
 0x109   : > { %v415_v15 = vadd.f32 %v2313_v13, %v1961_v43  ;;  %2635 = vtanh.f32 %v404_v11 }
 0x10a   : > { %v2624_v16 = vpop.eup %2623  ;;  %v406_v18 = vpop.f32.mrf.mxu0 }
 0x10b   : > { %v2626_v19 = vpop.eup %2625  ;;  %v407_v20 = vadd.f32 %v1961_v43, %v406_v18  ;;  %v436_v21 = vpack.c.bf16 %v2624_v16, %v2620_v12  ;;  %2637 = vtanh.f32 %v415_v15  ;;  %v2574_v43 = vld [vmem:[%s3268_s2 + $0xf0] sm:$0xff]  }
 0x10c   : > { %v437_v22 = vpack.c.bf16 %v2622_v14, %v2626_v19  ;;  %2380 = vmatprep.subr.bf16.mxu1 %v2574_v43  ;;  %v2573_v12 = vld [vmem:[%s3268_s2 + $0x130] sm:$0xff]  }
 0x10d   : > { %2639 = vtanh.f32 %v407_v20  ;;  %2334 = vmatprep.mubr.bf16.mxu1 %v436_v21  ;;  %2381 = vmatpush3.bf16.msra.mxu1 %v2574_v43  ;;  %v2580_v43 = vld [vmem:[%s3268_s2 + $0xd8] sm:$0xff]  }
 0x10e   : > { %2641 = vtanh.f32 %v412_v17  ;;  %2335 = vmatmul.mubr.bf16.gmra.mxu1 %v437_v22  ;;  %v2628_v23 = vpop.eup %2627  ;;  %2382 = vmatprep.subr.bf16.mxu1 %v2576_v39 }
 0x110   : > { %v2630_v24 = vpop.eup %2629 }
 0x111   : > { %2383 = vmatpush3.bf16.msra.mxu1 %v2576_v39 }
 0x112   : > { %v2632_v25 = vpop.eup %2631 }
 0x113   : > { %v2634_v26 = vpop.eup %2633  ;;  %v438_v27 = vpack.c.bf16 %v2632_v25, %v2628_v23 }
 0x114   : > { %v439_v28 = vpack.c.bf16 %v2630_v24, %v2634_v26 }
 0x115   : > { %2338 = vmatprep.mubr.bf16.mxu1 %v438_v27 }
 0x116   : > { %2339 = vmatmul.mubr.bf16.gmra.mxu1 %v439_v28  ;;  %v2636_v29 = vpop.eup %2635 }
 0x118   : > { %v2638_v30 = vpop.eup %2637 }
 0x11a   : > { %v2640_v31 = vpop.eup %2639 }
 0x11b   : > { %v2642_v32 = vpop.eup %2641  ;;  %v440_v33 = vpack.c.bf16 %v2640_v31, %v2636_v29 }
 0x11c   : > { %v441_v34 = vpack.c.bf16 %v2638_v30, %v2642_v32 }
 0x11d   : > { %2342 = vmatprep.mubr.bf16.mxu1 %v440_v33 }
 0x11e   : > { %2343 = vmatmul.mubr.bf16.gmra.mxu1 %v441_v34 }
 0x1c6   : > { %v2332_v44 = vpop.f32.mrf.mxu1 }
 0x1c7   : > { %v558_v50 = vadd.f32 %v2332_v44, %v1987_v45  ;;  %v2581_v44 = vld [vmem:[%s3268_s2 + $0x110] sm:$0xff]  }
 0x1c8   : > { %v549_v46 = vpop.f32.mrf.mxu1 }
 0x1c9   : > { %v550_v47 = vadd.f32 %v1987_v45, %v549_v46  ;;  %v2583_v46 = vld [vmem:[%s3268_s2 + $0x108] sm:$0xff]  }
 0x1ca   : > { %v2333_v48 = vpop.f32.mrf.mxu1 }
 0x1cb   : > { %v561_v49 = vadd.f32 %v2333_v48, %v1987_v45  ;;  %2643 = vtanh.f32 %v550_v47  ;;  %v2584_v47 = vld [vmem:[%s3268_s2 + $0xc8] sm:$0xff]   ;;  %v2585_v48 = vld [vmem:[%s3268_s2 + $0x100] sm:$0xff]  }
 0x1cc   : > { %v552_v51 = vpop.f32.mrf.mxu1 }
 0x1cd   : > { %v553_v52 = vadd.f32 %v1987_v45, %v552_v51  ;;  %2645 = vtanh.f32 %v561_v49  ;;  %v2586_v49 = vld [vmem:[%s3268_s2 + $0xc0] sm:$0xff]  }
 0x1ce   : > { %v2336_v53 = vpop.f32.mrf.mxu1  ;;  %v2013_v51 = vld [vmem:[%s3269_s3 + $0x2] ss:$0 sm:$0xff] }
 0x1cf   : > { %2647 = vtanh.f32 %v553_v52  ;;  %v574_v58 = vadd.f32 %v2336_v53, %v1987_v45 }
 0x1d0   : > { %2649 = vtanh.f32 %v558_v50  ;;  %v565_v54 = vpop.f32.mrf.mxu1 }
 0x1d1   : > { %v566_v55 = vadd.f32 %v1987_v45, %v565_v54 }
 0x1d2   : > { %v2337_v56 = vpop.f32.mrf.mxu1 }
 0x1d3   : > { %v577_v57 = vadd.f32 %v2337_v56, %v1987_v45  ;;  %2651 = vtanh.f32 %v566_v55 }
 0x1d4   : > { %v568_v59 = vpop.f32.mrf.mxu1 }
 0x1d5   : > { %v569_v60 = vadd.f32 %v1987_v45, %v568_v59  ;;  %2653 = vtanh.f32 %v577_v57 }
 0x1d6   : > { %v2340_v61 = vpop.f32.mrf.mxu1 }
 0x1d7   : > { %2655 = vtanh.f32 %v569_v60  ;;  %v590_v5 = vadd.f32 %v2340_v61, %v1987_v45 }
 0x1d8   : > { %2657 = vtanh.f32 %v574_v58  ;;  %v581_v62 = vpop.f32.mrf.mxu1  ;;  %v2644_v0 = vpop.eup %2643 }
 0x1d9   : > { %v582_v63 = vadd.f32 %v1987_v45, %v581_v62 }
 0x1da   : > { %v2341_v1 = vpop.f32.mrf.mxu1  ;;  %v2646_v2 = vpop.eup %2645 }
 0x1db   : > { %v593_v3 = vadd.f32 %v2341_v1, %v1987_v45  ;;  %2659 = vtanh.f32 %v582_v63 }
 0x1dc   : > { %v2648_v4 = vpop.eup %2647  ;;  %v584_v6 = vpop.f32.mrf.mxu1 }
 0x1dd   : > { %v2650_v7 = vpop.eup %2649  ;;  %v585_v8 = vadd.f32 %v1987_v45, %v584_v6  ;;  %v628_v9 = vpack.c.bf16 %v2648_v4, %v2644_v0  ;;  %2661 = vtanh.f32 %v593_v3 }
 0x1de   : > { %v2344_v10 = vpop.f32.mrf.mxu1  ;;  %v629_v11 = vpack.c.bf16 %v2646_v2, %v2650_v7 }
 0x1df   : > { %2663 = vtanh.f32 %v585_v8  ;;  %2362 = vmatprep.mubr.bf16.mxu0 %v628_v9  ;;  %v606_v20 = vadd.f32 %v2344_v10, %v1987_v45 }
 0x1e0   : > { %2665 = vtanh.f32 %v590_v5  ;;  %v597_v13 = vpop.f32.mrf.mxu1  ;;  %2363 = vmatmul.mubr.bf16.vlgmr.msra.gmra.mxu0 %v629_v11  ;;  %v2652_v15 = vpop.eup %2651 }
 0x1e1   : > { %v598_v14 = vadd.f32 %v1987_v45, %v597_v13  ;;  %2411 = vmatpush3.bf16.msra.mxu0 %v2571_v41  ;;  %v2578_v41 = vld [vmem:[%s3268_s2 + $0xe0] sm:$0xff]  }
 0x1e2   : > { %v2345_v16 = vpop.f32.mrf.mxu1  ;;  %2412 = vmatprep.subr.bf16.mxu0 %v2573_v12  ;;  %v2654_v17 = vpop.eup %2653  ;;  %2384 = vmatprep.subr.bf16.mxu1 %v2578_v41 }
 0x1e3   : > { %v609_v18 = vadd.f32 %v2345_v16, %v1987_v45  ;;  %2667 = vtanh.f32 %v598_v14  ;;  %2385 = vmatpush3.bf16.msra.mxu1 %v2578_v41 }
 0x1e4   : > { %v2656_v19 = vpop.eup %2655  ;;  %v600_v21 = vpop.f32.mrf.mxu1  ;;  %2386 = vmatprep.subr.bf16.mxu1 %v2580_v43 }
 0x1e5   : > { %v2658_v22 = vpop.eup %2657  ;;  %v601_v23 = vadd.f32 %v1987_v45, %v600_v21  ;;  %v630_v24 = vpack.c.bf16 %v2656_v19, %v2652_v15  ;;  %2413 = vmatpush3.bf16.msra.mxu0 %v2573_v12  ;;  %2669 = vtanh.f32 %v609_v18  ;;  %v2582_v45 = vld [vmem:[%s3268_s2 + $0xd0] sm:$0xff]  }
 0x1e6   : > { %v631_v25 = vpack.c.bf16 %v2654_v17, %v2658_v22  ;;  %2414 = vmatprep.subr.bf16.mxu0 %v2575_v38 }
 0x1e7   : > { %2671 = vtanh.f32 %v601_v23  ;;  %2366 = vmatprep.mubr.bf16.mxu0 %v630_v24  ;;  %2387 = vmatpush3.bf16.msra.mxu1 %v2580_v43  ;;  %v2587_v43 = vld [vmem:[%s3268_s2 + $0x178] sm:$0xff]  }
 0x1e8   : > { %2673 = vtanh.f32 %v606_v20  ;;  %2367 = vmatmul.mubr.bf16.gmra.mxu0 %v631_v25  ;;  %v2660_v26 = vpop.eup %2659  ;;  %2388 = vmatprep.subr.bf16.mxu1 %v2582_v45 }
 0x1e9   : > { %2415 = vmatpush3.bf16.msra.mxu0 %v2575_v38 }
 0x1ea   : > { %v2662_v27 = vpop.eup %2661  ;;  %2416 = vmatprep.subr.bf16.mxu0 %v2577_v40 }
 0x1eb   : > { %2389 = vmatpush3.bf16.msra.mxu1 %v2582_v45  ;;  %v2589_v45 = vld [vmem:[%s3268_s2 + $0x168] sm:$0xff]  }
 0x1ec   : > { %v2664_v28 = vpop.eup %2663  ;;  %2390 = vmatprep.subr.bf16.mxu1 %v2584_v47 }
 0x1ed   : > { %v2666_v29 = vpop.eup %2665  ;;  %v632_v30 = vpack.c.bf16 %v2664_v28, %v2660_v26  ;;  %2417 = vmatpush3.bf16.msra.mxu0 %v2577_v40 }
 0x1ee   : > { %v633_v31 = vpack.c.bf16 %v2662_v27, %v2666_v29  ;;  %2418 = vmatprep.subr.bf16.mxu0 %v2579_v42 }
 0x1ef   : > { %2370 = vmatprep.mubr.bf16.mxu0 %v632_v30  ;;  %2391 = vmatpush3.bf16.msra.mxu1 %v2584_v47  ;;  %v2591_v47 = vld [vmem:[%s3268_s2 + $0x158] sm:$0xff]  }
 0x1f0   : > { %2371 = vmatmul.mubr.bf16.gmra.mxu0 %v633_v31  ;;  %v2668_v32 = vpop.eup %2667  ;;  %2392 = vmatprep.subr.bf16.mxu1 %v2586_v49 }
 0x1f1   : > { %2419 = vmatpush3.bf16.msra.mxu0 %v2579_v42 }
 0x1f2   : > { %v2670_v33 = vpop.eup %2669  ;;  %2420 = vmatprep.subr.bf16.mxu0 %v2581_v44 }
 0x1f3   : > { %2393 = vmatpush3.bf16.msra.mxu1 %v2586_v49  ;;  %v2593_v49 = vld [vmem:[%s3268_s2 + $0x148] sm:$0xff]  }
 0x1f4   : > { %v2672_v34 = vpop.eup %2671  ;;  %2442 = vmatprep.subr.bf16.mxu1 %v2587_v43 }
 0x1f5   : > { %v2674_v35 = vpop.eup %2673  ;;  %v634_v36 = vpack.c.bf16 %v2672_v34, %v2668_v32  ;;  %2421 = vmatpush3.bf16.msra.mxu0 %v2581_v44  ;;  %v2588_v44 = vld [vmem:[%s3268_s2 + $0x170] sm:$0xff]  }
 0x1f6   : > { %v635_v37 = vpack.c.bf16 %v2670_v33, %v2674_v35  ;;  %2422 = vmatprep.subr.bf16.mxu0 %v2583_v46 }
 0x1f7   : > { %2374 = vmatprep.mubr.bf16.mxu0 %v634_v36 }
 0x1f8   : > { %2375 = vmatmul.mubr.bf16.gmra.mxu0 %v635_v37 }
 0x1f9   : > { %2423 = vmatpush3.bf16.msra.mxu0 %v2583_v46  ;;  %v2590_v46 = vld [vmem:[%s3268_s2 + $0x160] sm:$0xff]  }
 0x1fa   : > { %2424 = vmatprep.subr.bf16.mxu0 %v2585_v48 }
 0x1fd   : > { %2425 = vmatpush3.bf16.msra.mxu0 %v2585_v48  ;;  %v2592_v48 = vld [vmem:[%s3268_s2 + $0x150] sm:$0xff]  }
 0x2a0   : > { %v2364_v50 = vpop.f32.mrf.mxu0 }
 0x2a1   : > { %v752_v56 = vadd.f32 %v2364_v50, %v2013_v51  ;;  %v2594_v50 = vld [vmem:[%s3268_s2 + $0x140] sm:$0xff]  }
 0x2a2   : > { %v743_v52 = vpop.f32.mrf.mxu0 }
 0x2a3   : > { %v744_v53 = vadd.f32 %v2013_v51, %v743_v52  ;;  %v2596_v52 = vld [vmem:[%s3268_s2 + $0x1b0] sm:$0xff]  }
 0x2a4   : > { %v2365_v54 = vpop.f32.mrf.mxu0 }
 0x2a5   : > { %v755_v55 = vadd.f32 %v2365_v54, %v2013_v51  ;;  %2675 = vtanh.f32 %v744_v53  ;;  %v3033_v53 = vld [vmem:[%s3269_s3 + $0x3] ss:$0 sm:$0xff]  ;;  %v3038_v54 = vld [vmem:[%s3269_s3 + $0x4] ss:$0 sm:$0xff] }
 0x2a6   : > { %v746_v57 = vpop.f32.mrf.mxu0 }
 0x2a7   : > { %v747_v58 = vadd.f32 %v2013_v51, %v746_v57  ;;  %2677 = vtanh.f32 %v755_v55 }
 0x2a8   : > { %v2368_v59 = vpop.f32.mrf.mxu0 }
 0x2a9   : > { %2679 = vtanh.f32 %v747_v58  ;;  %v768_v0 = vadd.f32 %v2368_v59, %v2013_v51 }
 0x2aa   : > { %2681 = vtanh.f32 %v752_v56  ;;  %v759_v60 = vpop.f32.mrf.mxu0 }
 0x2ab   : > { %v760_v61 = vadd.f32 %v2013_v51, %v759_v60 }
 0x2ac   : > { %v2369_v62 = vpop.f32.mrf.mxu0 }
 0x2ad   : > { %v771_v63 = vadd.f32 %v2369_v62, %v2013_v51  ;;  %2683 = vtanh.f32 %v760_v61 }
 0x2ae   : > { %v762_v1 = vpop.f32.mrf.mxu0 }
 0x2af   : > { %v763_v2 = vadd.f32 %v2013_v51, %v762_v1  ;;  %2685 = vtanh.f32 %v771_v63 }
 0x2b0   : > { %v2372_v3 = vpop.f32.mrf.mxu0 }
 0x2b1   : > { %2687 = vtanh.f32 %v763_v2  ;;  %v784_v11 = vadd.f32 %v2372_v3, %v2013_v51 }
 0x2b2   : > { %2689 = vtanh.f32 %v768_v0  ;;  %v775_v4 = vpop.f32.mrf.mxu0  ;;  %v2676_v6 = vpop.eup %2675 }
 0x2b3   : > { %v776_v5 = vadd.f32 %v2013_v51, %v775_v4 }
 0x2b4   : > { %v2373_v7 = vpop.f32.mrf.mxu0  ;;  %v2678_v8 = vpop.eup %2677 }
 0x2b5   : > { %v787_v9 = vadd.f32 %v2373_v7, %v2013_v51  ;;  %2691 = vtanh.f32 %v776_v5 }
 0x2b6   : > { %v2680_v10 = vpop.eup %2679  ;;  %v778_v12 = vpop.f32.mrf.mxu0 }
 0x2b7   : > { %v2682_v13 = vpop.eup %2681  ;;  %v779_v14 = vadd.f32 %v2013_v51, %v778_v12  ;;  %v822_v15 = vpack.c.bf16 %v2680_v10, %v2676_v6  ;;  %2693 = vtanh.f32 %v787_v9 }
 0x2b8   : > { %v2376_v16 = vpop.f32.mrf.mxu0  ;;  %v823_v17 = vpack.c.bf16 %v2678_v8, %v2682_v13 }
 0x2b9   : > { %2695 = vtanh.f32 %v779_v14  ;;  %2394 = vmatprep.mubr.bf16.mxu1 %v822_v15  ;;  %2426 = vmatprep.mubr.bf16.mxu0 %v822_v15  ;;  %v800_v25 = vadd.f32 %v2376_v16, %v2013_v51 }
 0x2ba   : > { %2697 = vtanh.f32 %v784_v11  ;;  %v791_v18 = vpop.f32.mrf.mxu0  ;;  %2395 = vmatmul.mubr.bf16.vlgmr.msra.gmra.mxu1 %v823_v17  ;;  %2427 = vmatmul.mubr.bf16.vlgmr.msra.gmra.mxu0 %v823_v17  ;;  %v2684_v20 = vpop.eup %2683 }
 0x2bb   : > { %v792_v19 = vadd.f32 %v2013_v51, %v791_v18  ;;  %2443 = vmatpush3.bf16.msra.mxu1 %v2587_v43 }
 0x2bc   : > { %v2377_v21 = vpop.f32.mrf.mxu0  ;;  %v2686_v22 = vpop.eup %2685  ;;  %2444 = vmatprep.subr.bf16.mxu1 %v2588_v44 }
 0x2bd   : > { %v803_v23 = vadd.f32 %v2377_v21, %v2013_v51  ;;  %2699 = vtanh.f32 %v792_v19 }
 0x2be   : > { %v2688_v24 = vpop.eup %2687  ;;  %v794_v26 = vpop.f32.mrf.mxu0 }
 0x2bf   : > { %v2690_v27 = vpop.eup %2689  ;;  %v795_v28 = vadd.f32 %v2013_v51, %v794_v26  ;;  %v824_v29 = vpack.c.bf16 %v2688_v24, %v2684_v20  ;;  %2701 = vtanh.f32 %v803_v23  ;;  %2445 = vmatpush3.bf16.msra.mxu1 %v2588_v44  ;;  %v2595_v51 = vld [vmem:[%s3268_s2 + $0x1b8] sm:$0xff]  }
 0x2c0   : > { %v825_v30 = vpack.c.bf16 %v2686_v22, %v2690_v27  ;;  %2446 = vmatprep.subr.bf16.mxu1 %v2589_v45  ;;  %2474 = vmatprep.subr.bf16.mxu0 %v2595_v51 }
 0x2c1   : > { %2703 = vtanh.f32 %v795_v28  ;;  %2398 = vmatprep.mubr.bf16.mxu1 %v824_v29  ;;  %2430 = vmatprep.mubr.bf16.mxu0 %v824_v29 }
 0x2c2   : > { %2705 = vtanh.f32 %v800_v25  ;;  %2399 = vmatmul.mubr.bf16.gmra.mxu1 %v825_v30  ;;  %2431 = vmatmul.mubr.bf16.gmra.mxu0 %v825_v30  ;;  %v2692_v31 = vpop.eup %2691 }
 0x2c3   : > { %2447 = vmatpush3.bf16.msra.mxu1 %v2589_v45  ;;  %2475 = vmatpush3.bf16.msra.mxu0 %v2595_v51 }
 0x2c4   : > { %v2694_v32 = vpop.eup %2693  ;;  %2448 = vmatprep.subr.bf16.mxu1 %v2590_v46  ;;  %2476 = vmatprep.subr.bf16.mxu0 %v2596_v52 }
 0x2c6   : > { %v2696_v33 = vpop.eup %2695 }
 0x2c7   : > { %v2698_v34 = vpop.eup %2697  ;;  %v826_v35 = vpack.c.bf16 %v2696_v33, %v2692_v31  ;;  %2449 = vmatpush3.bf16.msra.mxu1 %v2590_v46  ;;  %2477 = vmatpush3.bf16.msra.mxu0 %v2596_v52 }
 0x2c8   : > { %v827_v36 = vpack.c.bf16 %v2694_v32, %v2698_v34  ;;  %2450 = vmatprep.subr.bf16.mxu1 %v2591_v47 }
 0x2c9   : > { %2402 = vmatprep.mubr.bf16.mxu1 %v826_v35  ;;  %2434 = vmatprep.mubr.bf16.mxu0 %v826_v35 }
 0x2ca   : > { %2403 = vmatmul.mubr.bf16.gmra.mxu1 %v827_v36  ;;  %2435 = vmatmul.mubr.bf16.gmra.mxu0 %v827_v36  ;;  %v2700_v37 = vpop.eup %2699 }
 0x2cb   : > { %2451 = vmatpush3.bf16.msra.mxu1 %v2591_v47 }
 0x2cc   : > { %v2702_v38 = vpop.eup %2701  ;;  %2452 = vmatprep.subr.bf16.mxu1 %v2592_v48 }
 0x2ce   : > { %v2704_v39 = vpop.eup %2703 }
 0x2cf   : > { %v2706_v40 = vpop.eup %2705  ;;  %v828_v41 = vpack.c.bf16 %v2704_v39, %v2700_v37  ;;  %2453 = vmatpush3.bf16.msra.mxu1 %v2592_v48 }
 0x2d0   : > { %v829_v42 = vpack.c.bf16 %v2702_v38, %v2706_v40  ;;  %2454 = vmatprep.subr.bf16.mxu1 %v2593_v49 }
 0x2d1   : > { %2406 = vmatprep.mubr.bf16.mxu1 %v828_v41  ;;  %2438 = vmatprep.mubr.bf16.mxu0 %v828_v41 }
 0x2d2   : > { %2407 = vmatmul.mubr.bf16.gmra.mxu1 %v829_v42  ;;  %2439 = vmatmul.mubr.bf16.gmra.mxu0 %v829_v42 }
 0x2d3   : > { %2455 = vmatpush3.bf16.msra.mxu1 %v2593_v49 }
 0x2d4   : > { %2456 = vmatprep.subr.bf16.mxu1 %v2594_v50 }
 0x2d7   : > { %2457 = vmatpush3.bf16.msra.mxu1 %v2594_v50 }
 0x37a   : > { %v2396_v55 = vpop.f32.mrf.mxu1  ;;  %v2428_v56 = vpop.f32.mrf.mxu0 }
 0x37b   : > { %v3046_v57 = vadd.f32 %v2396_v55, %v3033_v53  ;;  %v1116_v58 = vadd.f32 %v2428_v56, %v3038_v54 }
 0x37c   : > { %v937_v59 = vpop.f32.mrf.mxu1  ;;  %v1107_v60 = vpop.f32.mrf.mxu0 }
 0x37d   : > { %1834 = vst [vmem:[%s3043_s18 + $0x30] sm:$0xff] %v3046_v57  ;;  %v1188_v61 = vmul.f32 0.5, %v1116_v58  ;;  %1850 = vst [vmem:[%s3043_s18 + $0x38] sm:$0xff] %v1116_v58  ;;  %v3053_v62 = vadd.f32 %v3033_v53, %v937_v59  ;;  %v1108_v63 = vadd.f32 %v3038_v54, %v1107_v60  ;;  %v1172_v58 = vld [vmem:[%s3109_s22 + $0x10] sm:$0xff] }
 0x37e   : > { %v2397_v0 = vpop.f32.mrf.mxu1  ;;  %v2429_v1 = vpop.f32.mrf.mxu0 }
 0x37f   : > { %v1206_v2 = vmul.f32 1.442695, %v1188_v61  ;;  %1832 = vst [vmem:[%s3043_s18] sm:$0xff] %v3053_v62  ;;  %v1186_v3 = vmul.f32 0.5, %v1108_v63  ;;  %1848 = vst [vmem:[%s3043_s18 + $0x8] sm:$0xff] %v1108_v63  ;;  %v3060_v4 = vadd.f32 %v2397_v0, %v3033_v53  ;;  %v1119_v5 = vadd.f32 %v2429_v1, %v3038_v54 }
 0x380   : > { %v940_v6 = vpop.f32.mrf.mxu1  ;;  %v1110_v7 = vpop.f32.mrf.mxu0 }
 0x381   : > { %v1202_v8 = vmul.f32 1.442695, %v1186_v3  ;;  %1835 = vst [vmem:[%s3043_s18 + $0x48] sm:$0xff] %v3060_v4  ;;  %v1189_v9 = vmul.f32 0.5, %v1119_v5  ;;  %1851 = vst [vmem:[%s3043_s18 + $0x50] sm:$0xff] %v1119_v5  ;;  %v3067_v10 = vadd.f32 %v3033_v53, %v940_v6  ;;  %2707 = vpow2.f32 %v1206_v2  ;;  %v1170_v2 = vld [vmem:[%s3109_s22] sm:$0xff] }
 0x382   : > { %v1111_v11 = vadd.f32 %v3038_v54, %v1110_v7  ;;  %v2400_v12 = vpop.f32.mrf.mxu1  ;;  %v2432_v13 = vpop.f32.mrf.mxu0  ;;  %v1173_v3 = vld [vmem:[%s3109_s22 + $0x18] sm:$0xff] }
 0x383   : > { %v1208_v14 = vmul.f32 1.442695, %v1189_v9  ;;  %1833 = vst [vmem:[%s3043_s18 + $0x18] sm:$0xff] %v3067_v10  ;;  %v3073_v15 = vadd.f32 %v2400_v12, %v3033_v53  ;;  %v1132_v16 = vadd.f32 %v2432_v13, %v3038_v54  ;;  %2709 = vpow2.f32 %v1202_v8 }
 0x384   : > { %v1187_v17 = vmul.f32 0.5, %v1111_v11  ;;  %1849 = vst [vmem:[%s3043_s18 + $0x20] sm:$0xff] %v1111_v11  ;;  %v953_v18 = vpop.f32.mrf.mxu1  ;;  %v1123_v19 = vpop.f32.mrf.mxu0 }
 0x385   : > { %2711 = vpow2.f32 %v1208_v14  ;;  %1838 = vst [vmem:[%s3043_s18 + $0x90] sm:$0xff] %v3073_v15  ;;  %v1192_v20 = vmul.f32 0.5, %v1132_v16  ;;  %1854 = vst [vmem:[%s3043_s18 + $0x98] sm:$0xff] %v1132_v16  ;;  %v3081_v21 = vadd.f32 %v3033_v53, %v953_v18  ;;  %v1124_v22 = vadd.f32 %v3038_v54, %v1123_v19  ;;  %v1171_v14 = vld [vmem:[%s3109_s22 + $0x8] sm:$0xff] }
 0x386   : > { %v1204_v23 = vmul.f32 1.442695, %v1187_v17  ;;  %v2401_v24 = vpop.f32.mrf.mxu1  ;;  %v2433_v25 = vpop.f32.mrf.mxu0 }
 0x387   : > { %v1214_v26 = vmul.f32 1.442695, %v1192_v20  ;;  %1836 = vst [vmem:[%s3043_s18 + $0x60] sm:$0xff] %v3081_v21  ;;  %v1190_v27 = vmul.f32 0.5, %v1124_v22  ;;  %1852 = vst [vmem:[%s3043_s18 + $0x68] sm:$0xff] %v1124_v22  ;;  %v3088_v28 = vadd.f32 %v2401_v24, %v3033_v53  ;;  %v1135_v29 = vadd.f32 %v2433_v25, %v3038_v54 }
 0x388   : > { %2713 = vpow2.f32 %v1204_v23  ;;  %v956_v30 = vpop.f32.mrf.mxu1  ;;  %v1126_v31 = vpop.f32.mrf.mxu0 }
 0x389   : > { %v1210_v32 = vmul.f32 1.442695, %v1190_v27  ;;  %1839 = vst [vmem:[%s3043_s18 + $0xa8] sm:$0xff] %v3088_v28  ;;  %v1193_v33 = vmul.f32 0.5, %v1135_v29  ;;  %1855 = vst [vmem:[%s3043_s18 + $0xb0] sm:$0xff] %v1135_v29  ;;  %v3095_v34 = vadd.f32 %v3033_v53, %v956_v30  ;;  %v1127_v35 = vadd.f32 %v3038_v54, %v1126_v31 }
 0x38a   : > { %v2404_v36 = vpop.f32.mrf.mxu1  ;;  %v2436_v37 = vpop.f32.mrf.mxu0  ;;  %2715 = vpow2.f32 %v1214_v26 }
 0x38b   : > { %v1216_v38 = vmul.f32 1.442695, %v1193_v33  ;;  %1837 = vst [vmem:[%s3043_s18 + $0x78] sm:$0xff] %v3095_v34  ;;  %v3101_v39 = vadd.f32 %v2404_v36, %v3033_v53  ;;  %v1148_v40 = vadd.f32 %v2436_v37, %v3038_v54  ;;  %2717 = vpow2.f32 %v1210_v32  ;;  %1853 = vst [vmem:[%s3043_s18 + $0x80] sm:$0xff] %v1127_v35 }
 0x38c   : > { %v1191_v41 = vmul.f32 0.5, %v1127_v35  ;;  %v969_v42 = vpop.f32.mrf.mxu1  ;;  %v1139_v43 = vpop.f32.mrf.mxu0 }
 0x38d   : > { %2719 = vpow2.f32 %v1216_v38  ;;  %1842 = vst [vmem:[%s3043_s18 + $0xf0] sm:$0xff] %v3101_v39  ;;  %v1196_v44 = vmul.f32 0.5, %v1148_v40  ;;  %1858 = vst [vmem:[%s3043_s18 + $0xf8] sm:$0xff] %v1148_v40  ;;  %v3116_v45 = vadd.f32 %v3033_v53, %v969_v42  ;;  %v1140_v46 = vadd.f32 %v3038_v54, %v1139_v43  ;;  %v1177_v42 = vld [vmem:[%s3109_s22 + $0x38] sm:$0xff] }
 0x38e   : > { %v1212_v47 = vmul.f32 1.442695, %v1191_v41  ;;  %v2405_v48 = vpop.f32.mrf.mxu1  ;;  %v2437_v49 = vpop.f32.mrf.mxu0 }
 0x38f   : > { %v2708_v50 = vpop.eup %2707  ;;  %v1222_v51 = vmul.f32 1.442695, %v1196_v44  ;;  %1840 = vst [vmem:[%s3043_s18 + $0xc0] sm:$0xff] %v3116_v45  ;;  %v1194_v52 = vmul.f32 0.5, %v1140_v46  ;;  %1856 = vst [vmem:[%s3043_s18 + $0xc8] sm:$0xff] %v1140_v46  ;;  %v3123_v55 = vadd.f32 %v2405_v48, %v3033_v53  ;;  %v1151_v56 = vadd.f32 %v2437_v49, %v3038_v54  ;;  %v1174_v49 = vld [vmem:[%s3109_s22 + $0x20] sm:$0xff] }
 0x390   : > { %2721 = vpow2.f32 %v1212_v47  ;;  %v972_v59 = vpop.f32.mrf.mxu1  ;;  %v1142_v60 = vpop.f32.mrf.mxu0  ;;  %v1236_v9 = vmul.f32 %v2708_v50, %v1172_v58  ;;  %v1175_v58 = vld [vmem:[%s3109_s22 + $0x28] sm:$0xff] }
 0x391   : > { %v2710_v61 = vpop.eup %2709  ;;  %v1218_v63 = vmul.f32 1.442695, %v1194_v52  ;;  %1843 = vst [vmem:[%s3043_s18 + $0x108] sm:$0xff] %v3123_v55  ;;  %v1197_v0 = vmul.f32 0.5, %v1151_v56  ;;  %1859 = vst [vmem:[%s3043_s18 + $0x110] sm:$0xff] %v1151_v56  ;;  %v3131_v1 = vadd.f32 %v3033_v53, %v972_v59  ;;  %v1143_v6 = vadd.f32 %v3038_v54, %v1142_v60 }
 0x392   : > { %v2712_v5 = vpop.eup %2711  ;;  %v2408_v7 = vpop.f32.mrf.mxu1  ;;  %2723 = vpow2.f32 %v1222_v51  ;;  %v1234_v19 = vmul.f32 %v2710_v61, %v1170_v2  ;;  %v1252_v48 = vadd.f32 %v1236_v9, %v3046_v57  ;;  %v1176_v51 = vld [vmem:[%s3109_s22 + $0x30] sm:$0xff]  ;;  %v1178_v9 = vld [vmem:[%s3109_s22 + $0x40] sm:$0xff] }
 0x393   : > { %v2440_v8 = vpop.f32.mrf.mxu0  ;;  %v1224_v11 = vmul.f32 1.442695, %v1197_v0  ;;  %1841 = vst [vmem:[%s3043_s18 + $0xd8] sm:$0xff] %v3131_v1  ;;  %v3139_v12 = vadd.f32 %v2408_v7, %v3033_v53  ;;  %2725 = vpow2.f32 %v1218_v63  ;;  %v1195_v16 = vmul.f32 0.5, %v1143_v6  ;;  %1857 = vst [vmem:[%s3043_s18 + $0xe0] sm:$0xff] %v1143_v6  ;;  %v1181_v6 = vld [vmem:[%s3109_s22 + $0x58] sm:$0xff] }
 0x394   : > { %v1164_v13 = vadd.f32 %v2440_v8, %v3038_v54  ;;  %v985_v17 = vpop.f32.mrf.mxu1  ;;  %v1237_v20 = vmul.f32 %v2712_v5, %v1173_v3 }
 0x395   : > { %v1155_v18 = vpop.f32.mrf.mxu0  ;;  %v2714_v22 = vpop.eup %2713  ;;  %2727 = vpow2.f32 %v1224_v11  ;;  %1846 = vst [vmem:[%s3043_s18 + $0x150] sm:$0xff] %v3139_v12  ;;  %v3148_v24 = vadd.f32 %v3033_v53, %v985_v17  ;;  %v1220_v26 = vmul.f32 1.442695, %v1195_v16  ;;  %v1179_v17 = vld [vmem:[%s3109_s22 + $0x48] sm:$0xff] }
 0x396   : > { %v1200_v23 = vmul.f32 0.5, %v1164_v13  ;;  %1862 = vst [vmem:[%s3043_s18 + $0x158] sm:$0xff] %v1164_v13  ;;  %v1156_v25 = vadd.f32 %v3038_v54, %v1155_v18  ;;  %v2409_v27 = vpop.f32.mrf.mxu1  ;;  %v1235_v30 = vmul.f32 %v2714_v22, %v1171_v14  ;;  %v1253_v31 = vadd.f32 %v1237_v20, %v3060_v4  ;;  %v1180_v14 = vld [vmem:[%s3109_s22 + $0x50] sm:$0xff] }
 0x397   : > { %v2441_v29 = vpop.f32.mrf.mxu0  ;;  %1844 = vst [vmem:[%s3043_s18 + $0x120] sm:$0xff] %v3148_v24  ;;  %v3156_v35 = vadd.f32 %v2409_v27, %v3033_v53  ;;  %v2716_v37 = vpop.eup %2715  ;;  %2729 = vpow2.f32 %v1220_v26  ;;  %v1250_v4 = vadd.f32 %v1234_v19, %v3053_v62 }
 0x398   : > { %v1230_v32 = vmul.f32 1.442695, %v1200_v23  ;;  %v1198_v33 = vmul.f32 0.5, %v1156_v25  ;;  %1860 = vst [vmem:[%s3043_s18 + $0x128] sm:$0xff] %v1156_v25  ;;  %v1167_v36 = vadd.f32 %v2441_v29, %v3038_v54  ;;  %v988_v38 = vpop.f32.mrf.mxu1  ;;  %v1251_v41 = vadd.f32 %v1235_v30, %v3067_v10  ;;  %v2718_v43 = vpop.eup %2717  ;;  %v1185_v25 = vld [vmem:[%s3109_s22 + $0x78] sm:$0xff]  ;;  %v1182_v29 = vld [vmem:[%s3109_s22 + $0x60] sm:$0xff] }
 0x399   : > { %v1158_v40 = vpop.f32.mrf.mxu0  ;;  %1847 = vst [vmem:[%s3043_s18 + $0x168] sm:$0xff] %v3156_v35  ;;  %v3166_v47 = vadd.f32 %v3033_v53, %v988_v38  ;;  %v1267_v56 = vpack.c.bf16 %v1253_v31, %v1252_v48  ;;  %v1238_v53 = vmul.f32 %v2718_v43, %v1174_v49  ;;  %v2603_v48 = vld [vmem:[%s3268_s2 + $0x1f8] sm:$0xff]   ;;  %v2604_v49 = vld [vmem:[%s3268_s2 + $0x1f0] sm:$0xff]  }
 0x39a   : > { %v1226_v44 = vmul.f32 1.442695, %v1198_v33  ;;  %v1201_v46 = vmul.f32 0.5, %v1167_v36  ;;  %1863 = vst [vmem:[%s3043_s18 + $0x170] sm:$0xff] %v1167_v36  ;;  %v2720_v50 = vpop.eup %2719  ;;  %v1159_v62 = vadd.f32 %v3038_v54, %v1158_v40  ;;  %v1266_v10 = vpack.c.bf16 %v1251_v41, %v1250_v4  ;;  %v1183_v36 = vld [vmem:[%s3109_s22 + $0x68] sm:$0xff]  ;;  %2506 = vmatprep.subr.bf16.mxu1 %v2603_v48 }
 0x39b   : > { %2731 = vpow2.f32 %v1230_v32  ;;  %1845 = vst [vmem:[%s3043_s18 + $0x138] sm:$0xff] %v3166_v47  ;;  %v1241_v59 = vmul.f32 %v2720_v50, %v1177_v42  ;;  %v1240_v54 = vmul.f32 %v2716_v37, %v1176_v51  ;;  %v1254_v3 = vadd.f32 %v1238_v53, %v3081_v21  ;;  %v1184_v32 = vld [vmem:[%s3109_s22 + $0x70] sm:$0xff] }
 0x39c   : > { %v1232_v52 = vmul.f32 1.442695, %v1201_v46  ;;  %2733 = vpow2.f32 %v1226_v44  ;;  %v1199_v60 = vmul.f32 0.5, %v1159_v62  ;;  %1861 = vst [vmem:[%s3043_s18 + $0x140] sm:$0xff] %v1159_v62  ;;  %2458 = vmatprep.mubr.bf16.mxu1 %v1266_v10  ;;  %v2597_v44 = vld [vmem:[%s3268_s2 + $0x1a8] sm:$0xff]  }
 0x39d   : > { %v2722_v57 = vpop.eup %2721  ;;  %2459 = vmatmul.mubr.bf16.vlgmr.msra.gmra.mxu1 %v1267_v56  ;;  %v1257_v0 = vadd.f32 %v1241_v59, %v3088_v28  ;;  %v1256_v8 = vadd.f32 %v1240_v54, %v3073_v15  ;;  %2478 = vmatprep.subr.bf16.mxu0 %v2597_v44  ;;  %v2601_v46 = vld [vmem:[%s3268_s2 + $0x188] sm:$0xff]   ;;  %v2091_v62 = vld [vmem:[%s3269_s3 + $0x5] ss:$0 sm:$0xff] }
 0x39e   : > { %2735 = vpow2.f32 %v1232_v52  ;;  %v1228_v61 = vmul.f32 1.442695, %v1199_v60  ;;  %v1239_v63 = vmul.f32 %v2722_v57, %v1175_v58  ;;  %2479 = vmatpush3.bf16.msra.mxu0 %v2597_v44  ;;  %2507 = vmatpush3.bf16.msra.mxu1 %v2603_v48  ;;  %v2610_v48 = vld [vmem:[%s3268_s2 + $0x1c0] sm:$0xff]  }
 0x39f   : > { %v2724_v2 = vpop.eup %2723  ;;  %v1269_v16 = vpack.c.bf16 %v1257_v0, %v1256_v8  ;;  %2508 = vmatprep.subr.bf16.mxu1 %v2604_v49 }
 0x3a0   : > { %2737 = vpow2.f32 %v1228_v61  ;;  %v1255_v5 = vadd.f32 %v1239_v63, %v3095_v34  ;;  %v2726_v7 = vpop.eup %2725  ;;  %v1244_v21 = vmul.f32 %v2724_v2, %v1180_v14 }
 0x3a1   : > { %v1242_v28 = vmul.f32 %v2726_v7, %v1178_v9 }
 0x3a2   : > { %v2728_v11 = vpop.eup %2727  ;;  %v1268_v13 = vpack.c.bf16 %v1255_v5, %v1254_v3  ;;  %v1260_v27 = vadd.f32 %v1244_v21, %v3101_v39  ;;  %2509 = vmatpush3.bf16.msra.mxu1 %v2604_v49 }
 0x3a3   : > { %v1245_v18 = vmul.f32 %v2728_v11, %v1181_v6  ;;  %v1258_v22 = vadd.f32 %v1242_v28, %v3116_v45 }
 0x3a4   : > { %2462 = vmatprep.mubr.bf16.mxu1 %v1268_v13  ;;  %v2730_v19 = vpop.eup %2729 }
 0x3a5   : > { %2463 = vmatmul.mubr.bf16.gmra.mxu1 %v1269_v16  ;;  %v1243_v34 = vmul.f32 %v2730_v19, %v1179_v17  ;;  %v1261_v20 = vadd.f32 %v1245_v18, %v3123_v55 }
 0x3a7   : > { %v1259_v23 = vadd.f32 %v1243_v34, %v3131_v1  ;;  %v1271_v33 = vpack.c.bf16 %v1261_v20, %v1260_v27 }
 0x3a8   : > { %v2732_v15 = vpop.eup %2731 }
 0x3a9   : > { %v2734_v26 = vpop.eup %2733  ;;  %v1270_v31 = vpack.c.bf16 %v1259_v23, %v1258_v22  ;;  %v1248_v55 = vmul.f32 %v2732_v15, %v1184_v32 }
 0x3aa   : > { %v1246_v38 = vmul.f32 %v2734_v26, %v1182_v29 }
 0x3ab   : > { %v2736_v30 = vpop.eup %2735  ;;  %2466 = vmatprep.mubr.bf16.mxu1 %v1270_v31  ;;  %v1264_v39 = vadd.f32 %v1248_v55, %v3139_v12  ;;  %v2599_v12 = vld [vmem:[%s3268_s2 + $0x198] sm:$0xff]  }
 0x3ac   : > { %v1249_v37 = vmul.f32 %v2736_v30, %v1185_v25  ;;  %v1262_v1 = vadd.f32 %v1246_v38, %v3148_v24  ;;  %v2600_v24 = vld [vmem:[%s3268_s2 + $0x190] sm:$0xff]  }
 0x3ad   : > { %v2738_v40 = vpop.eup %2737  ;;  %2467 = vmatmul.mubr.bf16.gmra.mxu1 %v1271_v33 }
 0x3ae   : > { %v1247_v4 = vmul.f32 %v2738_v40, %v1183_v36  ;;  %v1265_v45 = vadd.f32 %v1249_v37, %v3156_v35  ;;  %v2598_v35 = vld [vmem:[%s3268_s2 + $0x1a0] sm:$0xff]  }
 0x3af   : > { %2480 = vmatprep.subr.bf16.mxu0 %v2598_v35 }
 0x3b0   : > { %v1263_v41 = vadd.f32 %v1247_v4, %v3166_v47  ;;  %v1273_v43 = vpack.c.bf16 %v1265_v45, %v1264_v39  ;;  %2481 = vmatpush3.bf16.msra.mxu0 %v2598_v35  ;;  %v2602_v47 = vld [vmem:[%s3268_s2 + $0x180] sm:$0xff]   ;;  %v2605_v35 = vld [vmem:[%s3268_s2 + $0x1e8] sm:$0xff]  }
 0x3b1   : > { %2482 = vmatprep.subr.bf16.mxu0 %v2599_v12  ;;  %2510 = vmatprep.subr.bf16.mxu1 %v2605_v35 }
 0x3b2   : > { %v1272_v42 = vpack.c.bf16 %v1263_v41, %v1262_v1  ;;  %2511 = vmatpush3.bf16.msra.mxu1 %v2605_v35 }
 0x3b4   : > { %2470 = vmatprep.mubr.bf16.mxu1 %v1272_v42  ;;  %2483 = vmatpush3.bf16.msra.mxu0 %v2599_v12  ;;  %v2606_v12 = vld [vmem:[%s3268_s2 + $0x1e0] sm:$0xff]  }
 0x3b5   : > { %2471 = vmatmul.mubr.bf16.gmra.mxu1 %v1273_v43  ;;  %2484 = vmatprep.subr.bf16.mxu0 %v2600_v24 }
 0x3b6   : > { %2512 = vmatprep.subr.bf16.mxu1 %v2606_v12 }
 0x3b7   : > { %2513 = vmatpush3.bf16.msra.mxu1 %v2606_v12 }
 0x3b8   : > { %2485 = vmatpush3.bf16.msra.mxu0 %v2600_v24  ;;  %v2607_v24 = vld [vmem:[%s3268_s2 + $0x1d8] sm:$0xff]  }
 0x3b9   : > { %2486 = vmatprep.subr.bf16.mxu0 %v2601_v46  ;;  %2514 = vmatprep.subr.bf16.mxu1 %v2607_v24 }
 0x3bb   : > { %2515 = vmatpush3.bf16.msra.mxu1 %v2607_v24 }
 0x3bc   : > { %2487 = vmatpush3.bf16.msra.mxu0 %v2601_v46  ;;  %v2608_v46 = vld [vmem:[%s3268_s2 + $0x1d0] sm:$0xff]  }
 0x3bd   : > { %2488 = vmatprep.subr.bf16.mxu0 %v2602_v47  ;;  %2516 = vmatprep.subr.bf16.mxu1 %v2608_v46 }
 0x3bf   : > { %2517 = vmatpush3.bf16.msra.mxu1 %v2608_v46 }
 0x3c0   : > { %2489 = vmatpush3.bf16.msra.mxu0 %v2602_v47  ;;  %v2609_v47 = vld [vmem:[%s3268_s2 + $0x1c8] sm:$0xff]  }
 0x3c1   : > { %2518 = vmatprep.subr.bf16.mxu1 %v2609_v47 }
 0x3c3   : > { %2519 = vmatpush3.bf16.msra.mxu1 %v2609_v47 }
 0x3c4   : > { %2520 = vmatprep.subr.bf16.mxu1 %v2610_v48 }
 0x3c7   : > { %2521 = vmatpush3.bf16.msra.mxu1 %v2610_v48 }
 0x45d   : > { %v2460_v50 = vpop.f32.mrf.mxu1 }
 0x45e   : > { %v1390_v58 = vadd.f32 %v2460_v50, %v2091_v62  ;;  %v2117_v50 = vld [vmem:[%s3269_s3 + $0x6] ss:$0 sm:$0xff] }
 0x45f   : > { %v1381_v10 = vpop.f32.mrf.mxu1 }
 0x460   : > { %v1382_v51 = vadd.f32 %v2091_v62, %v1381_v10 }
 0x461   : > { %v2461_v52 = vpop.f32.mrf.mxu1 }
 0x462   : > { %v1393_v56 = vadd.f32 %v2461_v52, %v2091_v62  ;;  %2739 = vtanh.f32 %v1382_v51 }
 0x463   : > { %v1384_v59 = vpop.f32.mrf.mxu1 }
 0x464   : > { %v1385_v60 = vadd.f32 %v2091_v62, %v1384_v59  ;;  %2741 = vtanh.f32 %v1393_v56 }
 0x465   : > { %v2464_v53 = vpop.f32.mrf.mxu1 }
 0x466   : > { %2743 = vtanh.f32 %v1385_v60  ;;  %v1406_v0 = vadd.f32 %v2464_v53, %v2091_v62 }
 0x467   : > { %2745 = vtanh.f32 %v1390_v58  ;;  %v1397_v57 = vpop.f32.mrf.mxu1 }
 0x468   : > { %v1398_v54 = vadd.f32 %v2091_v62, %v1397_v57 }
 0x469   : > { %v2465_v61 = vpop.f32.mrf.mxu1 }
 0x46a   : > { %v1409_v63 = vadd.f32 %v2465_v61, %v2091_v62  ;;  %2747 = vtanh.f32 %v1398_v54 }
 0x46b   : > { %v1400_v2 = vpop.f32.mrf.mxu1 }
 0x46c   : > { %v1401_v3 = vadd.f32 %v2091_v62, %v1400_v2  ;;  %2749 = vtanh.f32 %v1409_v63 }
 0x46d   : > { %v2468_v5 = vpop.f32.mrf.mxu1 }
 0x46e   : > { %2751 = vtanh.f32 %v1401_v3  ;;  %v1422_v16 = vadd.f32 %v2468_v5, %v2091_v62 }
 0x46f   : > { %2753 = vtanh.f32 %v1406_v0  ;;  %v1413_v6 = vpop.f32.mrf.mxu1  ;;  %v2740_v8 = vpop.eup %2739 }
 0x470   : > { %v1414_v7 = vadd.f32 %v2091_v62, %v1413_v6 }
 0x471   : > { %v2469_v9 = vpop.f32.mrf.mxu1  ;;  %v2742_v11 = vpop.eup %2741 }
 0x472   : > { %v1425_v13 = vadd.f32 %v2469_v9, %v2091_v62  ;;  %2755 = vtanh.f32 %v1414_v7 }
 0x473   : > { %v2744_v14 = vpop.eup %2743  ;;  %v1416_v17 = vpop.f32.mrf.mxu1 }
 0x474   : > { %v2746_v18 = vpop.eup %2745  ;;  %v1417_v28 = vadd.f32 %v2091_v62, %v1416_v17  ;;  %v1460_v19 = vpack.c.bf16 %v2744_v14, %v2740_v8  ;;  %2757 = vtanh.f32 %v1425_v13 }
 0x475   : > { %v2472_v21 = vpop.f32.mrf.mxu1  ;;  %v1461_v34 = vpack.c.bf16 %v2742_v11, %v2746_v18 }
 0x476   : > { %2759 = vtanh.f32 %v1417_v28  ;;  %2490 = vmatprep.mubr.bf16.mxu0 %v1460_v19  ;;  %v1438_v29 = vadd.f32 %v2472_v21, %v2091_v62 }
 0x477   : > { %2761 = vtanh.f32 %v1422_v16  ;;  %v1429_v20 = vpop.f32.mrf.mxu1  ;;  %2491 = vmatmul.mubr.bf16.vlgmr.msra.gmra.mxu0 %v1461_v34  ;;  %v2748_v22 = vpop.eup %2747 }
 0x478   : > { %v1430_v15 = vadd.f32 %v2091_v62, %v1429_v20 }
 0x479   : > { %v2473_v23 = vpop.f32.mrf.mxu1  ;;  %v2750_v25 = vpop.eup %2749 }
 0x47a   : > { %v1441_v26 = vadd.f32 %v2473_v23, %v2091_v62  ;;  %2763 = vtanh.f32 %v1430_v15 }
 0x47b   : > { %v2752_v27 = vpop.eup %2751  ;;  %v1432_v30 = vpop.f32.mrf.mxu1 }
 0x47c   : > { %v2754_v31 = vpop.eup %2753  ;;  %v1433_v32 = vadd.f32 %v2091_v62, %v1432_v30  ;;  %v1462_v33 = vpack.c.bf16 %v2752_v27, %v2748_v22  ;;  %2765 = vtanh.f32 %v1441_v26 }
 0x47d   : > { %v1463_v36 = vpack.c.bf16 %v2750_v25, %v2754_v31 }
 0x47e   : > { %2767 = vtanh.f32 %v1433_v32  ;;  %2494 = vmatprep.mubr.bf16.mxu0 %v1462_v33 }
 0x47f   : > { %2769 = vtanh.f32 %v1438_v29  ;;  %2495 = vmatmul.mubr.bf16.gmra.mxu0 %v1463_v36  ;;  %v2756_v37 = vpop.eup %2755 }
 0x481   : > { %v2758_v38 = vpop.eup %2757 }
 0x483   : > { %v2760_v40 = vpop.eup %2759 }
 0x484   : > { %v2762_v55 = vpop.eup %2761  ;;  %v1464_v4 = vpack.c.bf16 %v2760_v40, %v2756_v37 }
 0x485   : > { %v1465_v45 = vpack.c.bf16 %v2758_v38, %v2762_v55 }
 0x486   : > { %2498 = vmatprep.mubr.bf16.mxu0 %v1464_v4 }
 0x487   : > { %2499 = vmatmul.mubr.bf16.gmra.mxu0 %v1465_v45  ;;  %v2764_v1 = vpop.eup %2763 }
 0x489   : > { %v2766_v41 = vpop.eup %2765 }
 0x48b   : > { %v2768_v39 = vpop.eup %2767 }
 0x48c   : > { %v2770_v42 = vpop.eup %2769  ;;  %v1466_v43 = vpack.c.bf16 %v2768_v39, %v2764_v1 }
 0x48d   : > { %v1467_v44 = vpack.c.bf16 %v2766_v41, %v2770_v42 }
 0x48e   : > { %2502 = vmatprep.mubr.bf16.mxu0 %v1466_v43 }
 0x48f   : > { %2503 = vmatmul.mubr.bf16.gmra.mxu0 %v1467_v44  ;;  %v2143_v44 = vld [vmem:[%s3269_s3 + $0x7] ss:$0 sm:$0xff] }
 0x537   : > { %v2492_v49 = vpop.f32.mrf.mxu0 }
 0x538   : > { %v1584_v56 = vadd.f32 %v2492_v49, %v2117_v50 }
 0x539   : > { %v1575_v62 = vpop.f32.mrf.mxu0 }
 0x53a   : > { %v1576_v10 = vadd.f32 %v2117_v50, %v1575_v62 }
 0x53b   : > { %v2493_v51 = vpop.f32.mrf.mxu0 }
 0x53c   : > { %v1587_v52 = vadd.f32 %v2493_v51, %v2117_v50  ;;  %2771 = vtanh.f32 %v1576_v10 }
 0x53d   : > { %v1578_v58 = vpop.f32.mrf.mxu0 }
 0x53e   : > { %v1579_v59 = vadd.f32 %v2117_v50, %v1578_v58  ;;  %2773 = vtanh.f32 %v1587_v52 }
 0x53f   : > { %v2496_v60 = vpop.f32.mrf.mxu0 }
 0x540   : > { %2775 = vtanh.f32 %v1579_v59  ;;  %v1600_v63 = vadd.f32 %v2496_v60, %v2117_v50 }
 0x541   : > { %2777 = vtanh.f32 %v1584_v56  ;;  %v1591_v53 = vpop.f32.mrf.mxu0 }
 0x542   : > { %v1592_v57 = vadd.f32 %v2117_v50, %v1591_v53 }
 0x543   : > { %v2497_v54 = vpop.f32.mrf.mxu0 }
 0x544   : > { %v1603_v61 = vadd.f32 %v2497_v54, %v2117_v50  ;;  %2779 = vtanh.f32 %v1592_v57 }
 0x545   : > { %v1594_v0 = vpop.f32.mrf.mxu0 }
 0x546   : > { %v1595_v2 = vadd.f32 %v2117_v50, %v1594_v0  ;;  %2781 = vtanh.f32 %v1603_v61 }
 0x547   : > { %v2500_v3 = vpop.f32.mrf.mxu0 }
 0x548   : > { %2783 = vtanh.f32 %v1595_v2  ;;  %v1616_v14 = vadd.f32 %v2500_v3, %v2117_v50 }
 0x549   : > { %2785 = vtanh.f32 %v1600_v63  ;;  %v1607_v5 = vpop.f32.mrf.mxu0  ;;  %v2772_v7 = vpop.eup %2771 }
 0x54a   : > { %v1608_v6 = vadd.f32 %v2117_v50, %v1607_v5 }
 0x54b   : > { %v2501_v8 = vpop.f32.mrf.mxu0  ;;  %v2774_v9 = vpop.eup %2773 }
 0x54c   : > { %v1619_v11 = vadd.f32 %v2501_v8, %v2117_v50  ;;  %2787 = vtanh.f32 %v1608_v6 }
 0x54d   : > { %v2776_v13 = vpop.eup %2775  ;;  %v1610_v16 = vpop.f32.mrf.mxu0 }
 0x54e   : > { %v2778_v17 = vpop.eup %2777  ;;  %v1611_v18 = vadd.f32 %v2117_v50, %v1610_v16  ;;  %v1654_v28 = vpack.c.bf16 %v2776_v13, %v2772_v7  ;;  %2789 = vtanh.f32 %v1619_v11 }
 0x54f   : > { %v2504_v19 = vpop.f32.mrf.mxu0  ;;  %v1655_v21 = vpack.c.bf16 %v2774_v9, %v2778_v17 }
 0x550   : > { %2791 = vtanh.f32 %v1611_v18  ;;  %2522 = vmatprep.mubr.bf16.mxu1 %v1654_v28  ;;  %v1632_v27 = vadd.f32 %v2504_v19, %v2117_v50 }
 0x551   : > { %2793 = vtanh.f32 %v1616_v14  ;;  %v1623_v34 = vpop.f32.mrf.mxu0  ;;  %2523 = vmatmul.mubr.bf16.vlgmr.msra.gmra.mxu1 %v1655_v21  ;;  %v2780_v15 = vpop.eup %2779 }
 0x552   : > { %v1624_v20 = vadd.f32 %v2117_v50, %v1623_v34 }
 0x553   : > { %v2505_v22 = vpop.f32.mrf.mxu0  ;;  %v2782_v23 = vpop.eup %2781 }
 0x554   : > { %v1635_v25 = vadd.f32 %v2505_v22, %v2117_v50  ;;  %2795 = vtanh.f32 %v1624_v20 }
 0x555   : > { %v2784_v26 = vpop.eup %2783  ;;  %v1626_v29 = vpop.f32.mrf.mxu0 }
 0x556   : > { %v2786_v30 = vpop.eup %2785  ;;  %v1627_v31 = vadd.f32 %v2117_v50, %v1626_v29  ;;  %v1656_v32 = vpack.c.bf16 %v2784_v26, %v2780_v15  ;;  %2797 = vtanh.f32 %v1635_v25 }
 0x557   : > { %v1657_v33 = vpack.c.bf16 %v2782_v23, %v2786_v30 }
 0x558   : > { %2799 = vtanh.f32 %v1627_v31  ;;  %2526 = vmatprep.mubr.bf16.mxu1 %v1656_v32 }
 0x559   : > { %2801 = vtanh.f32 %v1632_v27  ;;  %2527 = vmatmul.mubr.bf16.gmra.mxu1 %v1657_v33  ;;  %v2788_v36 = vpop.eup %2787 }
 0x55b   : > { %v2790_v37 = vpop.eup %2789 }
 0x55d   : > { %v2792_v38 = vpop.eup %2791 }
 0x55e   : > { %v2794_v40 = vpop.eup %2793  ;;  %v1658_v55 = vpack.c.bf16 %v2792_v38, %v2788_v36 }
 0x55f   : > { %v1659_v4 = vpack.c.bf16 %v2790_v37, %v2794_v40 }
 0x560   : > { %2530 = vmatprep.mubr.bf16.mxu1 %v1658_v55 }
 0x561   : > { %2531 = vmatmul.mubr.bf16.gmra.mxu1 %v1659_v4  ;;  %v2796_v45 = vpop.eup %2795 }
 0x563   : > { %v2798_v1 = vpop.eup %2797 }
 0x565   : > { %v2800_v41 = vpop.eup %2799 }
 0x566   : > { %v2802_v39 = vpop.eup %2801  ;;  %v1660_v42 = vpack.c.bf16 %v2800_v41, %v2796_v45 }
 0x567   : > { %v1661_v43 = vpack.c.bf16 %v2798_v1, %v2802_v39 }
 0x568   : > { %2534 = vmatprep.mubr.bf16.mxu1 %v1660_v42 }
 0x569   : > { %2535 = vmatmul.mubr.bf16.gmra.mxu1 %v1661_v43 }
 0x611   : > { %v2524_v35 = vpop.f32.mrf.mxu1 }
 0x612   : > { %v1778_v12 = vadd.f32 %v2524_v35, %v2143_v44 }
 0x613   : > { %v1769_v24 = vpop.f32.mrf.mxu1 }
 0x614   : > { %1866 = vst [vmem:[%s3043_s18 + $0x40] sm:$0xff] %v1778_v12  ;;  %v1770_v46 = vadd.f32 %v2143_v44, %v1769_v24 }
 0x615   : > { %v2525_v47 = vpop.f32.mrf.mxu1 }
 0x616   : > { %1864 = vst [vmem:[%s3043_s18 + $0x10] sm:$0xff] %v1770_v46  ;;  %v1781_v48 = vadd.f32 %v2525_v47, %v2143_v44 }
 0x617   : > { %v1772_v49 = vpop.f32.mrf.mxu1 }
 0x618   : > { %1867 = vst [vmem:[%s3043_s18 + $0x58] sm:$0xff] %v1781_v48  ;;  %v1773_v50 = vadd.f32 %v2143_v44, %v1772_v49 }
 0x619   : > { %v2528_v62 = vpop.f32.mrf.mxu1 }
 0x61a   : > { %1865 = vst [vmem:[%s3043_s18 + $0x28] sm:$0xff] %v1773_v50  ;;  %v1794_v10 = vadd.f32 %v2528_v62, %v2143_v44 }
 0x61b   : > { %v1785_v51 = vpop.f32.mrf.mxu1 }
 0x61c   : > { %1870 = vst [vmem:[%s3043_s18 + $0xa0] sm:$0xff] %v1794_v10  ;;  %v1786_v52 = vadd.f32 %v2143_v44, %v1785_v51 }
 0x61d   : > { %v2529_v56 = vpop.f32.mrf.mxu1 }
 0x61e   : > { %1868 = vst [vmem:[%s3043_s18 + $0x70] sm:$0xff] %v1786_v52  ;;  %v1797_v58 = vadd.f32 %v2529_v56, %v2143_v44 }
 0x61f   : > { %v1788_v59 = vpop.f32.mrf.mxu1 }
 0x620   : > { %1871 = vst [vmem:[%s3043_s18 + $0xb8] sm:$0xff] %v1797_v58  ;;  %v1789_v60 = vadd.f32 %v2143_v44, %v1788_v59 }
 0x621   : > { %v2532_v53 = vpop.f32.mrf.mxu1 }
 0x622   : > { %1869 = vst [vmem:[%s3043_s18 + $0x88] sm:$0xff] %v1789_v60  ;;  %v1810_v57 = vadd.f32 %v2532_v53, %v2143_v44 }
 0x623   : > { %v1801_v54 = vpop.f32.mrf.mxu1 }
 0x624   : > { %1874 = vst [vmem:[%s3043_s18 + $0x100] sm:$0xff] %v1810_v57  ;;  %v1802_v61 = vadd.f32 %v2143_v44, %v1801_v54 }
 0x625   : > { %v2533_v63 = vpop.f32.mrf.mxu1 }
 0x626   : > { %1872 = vst [vmem:[%s3043_s18 + $0xd0] sm:$0xff] %v1802_v61  ;;  %v1813_v0 = vadd.f32 %v2533_v63, %v2143_v44 }
 0x627   : > { %v1804_v2 = vpop.f32.mrf.mxu1 }
 0x628   : > { %1875 = vst [vmem:[%s3043_s18 + $0x118] sm:$0xff] %v1813_v0  ;;  %v1805_v3 = vadd.f32 %v2143_v44, %v1804_v2 }
 0x629   : > { %v2536_v5 = vpop.f32.mrf.mxu1 }
 0x62a   : > { %1873 = vst [vmem:[%s3043_s18 + $0xe8] sm:$0xff] %v1805_v3  ;;  %v1826_v6 = vadd.f32 %v2536_v5, %v2143_v44 }
 0x62b   : > { %v1817_v7 = vpop.f32.mrf.mxu1 }
 0x62c   : > { %1878 = vst [vmem:[%s3043_s18 + $0x160] sm:$0xff] %v1826_v6  ;;  %v1818_v8 = vadd.f32 %v2143_v44, %v1817_v7 }
 0x62d   : > { %v2537_v9 = vpop.f32.mrf.mxu1 }
 0x62e   : > { %1876 = vst [vmem:[%s3043_s18 + $0x130] sm:$0xff] %v1818_v8  ;;  %v1829_v11 = vadd.f32 %v2537_v9, %v2143_v44 }
 0x62f   : > { %v1820_v13 = vpop.f32.mrf.mxu1 }
 0x630   : > { %1879 = vst [vmem:[%s3043_s18 + $0x178] sm:$0xff] %v1829_v11  ;;  %v1821_v14 = vadd.f32 %v2143_v44, %v1820_v13 }
 0x632   : > { %1877 = vst [vmem:[%s3043_s18 + $0x148] sm:$0xff] %v1821_v14 }
 0x633 PF: > { %s14_s15 = sadd.s32 1, %s2809_s15  }
 0x634   : > { %p11_p4 = scmp.ge.s32.totalorder %s14_s15, 4  }
 0x636   :  { %13 = sbr.rel (!%p11_p4) target bundleno = 1 (0x1), region = 83 }

</bundles_post_ra>
